<compile_context>
chip_gen: v7x
topology: tpu7x:2x2x1
jax: 0.10.0
libtpu: 0.0.40
codegen_flags: <defaults>
</compile_context>

<pallas_src>
import jax
import jax.numpy as jnp
from jax import lax
from jax.experimental import pallas as pl
from jax.experimental.pallas import tpu as pltpu

# ----------------------------------------------------------------------------
# Hyper-parameters (mirrors opt / wordrepr of the PyTorch module)
# ----------------------------------------------------------------------------
BATCH = 2          # B
SEQ = 8            # T
VOCAB = 20         # synthetic wordrepr vocabulary
INPUT_SIZE = 16    # wordrepr.input_size
HIDDEN_DIM = 32    # opt.hidden_dim
BRNN = True        # opt.brnn  -> per-direction hidden = HIDDEN_DIM // 2
NLAYERS = 1        # opt.nlayers
NUM_TAGS = 5       # wordrepr.outsize == len(wordrepr.tag_vocab)

H = HIDDEN_DIM // 2 if BRNN else HIDDEN_DIM   # per-direction hidden (16)
D = INPUT_SIZE
K = NUM_TAGS

HP = 128           # lane-padded width of one gate block
GP = 3 * HP        # all three gates (r, z, n) lane-padded -> 384
KP = 128           # lane-padded tag width for the emissions output

assert H <= HP and K <= KP

# --- packed-parameter slab layout (static row offsets, width = 2*GP = 768) ---
R_WI = 0                         # [D, 2*GP]  input->hidden, fwd cols 0:GP, bwd GP:2GP
R_WH = R_WI + D                  # [H, 2*GP]  hidden->hidden, same column layout
R_WOUT = R_WH + H                # [H, 2*KP]  hidden2tag: fwd cols 0:KP, bwd KP:2KP
R_MISC = R_WOUT + H
R_BI = R_MISC                    # [1, 2*GP]
R_BOUT = R_MISC + 1              # [1, KP]
R_BH = R_MISC + 2                # [2B, GP]   rows 0:B -> b_hh fwd, rows B:2B -> bwd
R_START = R_BH + 2 * BATCH       # [1, K]
R_END = R_START + 1              # [1, K]
R_TRANS = R_MISC + 8             # [K, K]
PACK_ROWS = ((R_TRANS + K + 7) // 8) * 8
PACK_COLS = 2 * GP


# ----------------------------------------------------------------------------
# Fused kernel: BiGRU + hidden2tag + CRF NLL
# ----------------------------------------------------------------------------
def _fused_gru_crf_kernel(x_ref, lab_ref, p_ref, em_ref, loss_ref):
    T, B = SEQ, BATCH

    # --- unpack parameters: static slices of the single packed VMEM buffer ---
    wi = p_ref[R_WI:R_WI + D, :]                       # [D, 2*GP]
    wh = p_ref[R_WH:R_WH + H, :]                       # [H, 2*GP]
    wout_f = p_ref[R_WOUT:R_WOUT + H, 0:KP]            # [H, KP]
    wout_b = p_ref[R_WOUT:R_WOUT + H, KP:2 * KP]       # [H, KP]
    bi = p_ref[R_BI:R_BI + 1, :]                       # [1, 2*GP]
    bout = p_ref[R_BOUT:R_BOUT + 1, 0:KP]              # [1, KP]
    bh = p_ref[R_BH:R_BH + 2 * B, 0:GP]                # [2B, GP]
    start = p_ref[R_START:R_START + 1, 0:K]            # [1, K]
    end = p_ref[R_END:R_END + 1, 0:K]                  # [1, K]
    trans = p_ref[R_TRANS:R_TRANS + K, 0:K]            # [K, K] (from, to)

    x = x_ref[...]                                     # [T*B, D] time-major, batch fast

    # --- input->hidden projections for both directions, one matmul, off-chain
    gx = jnp.dot(x, wi, preferred_element_type=jnp.float32) + bi   # [T*B, 2*GP]

    # Hoisted per-step stacked gate inputs (pure function of gx -> off-chain):
    # rows 0:B = forward direction at time t, rows B:2B = backward at T-1-t.
    gx_steps = [
        jnp.concatenate(
            [gx[t * B:(t + 1) * B, 0:GP],
             gx[(T - 1 - t) * B:(T - t) * B, GP:2 * GP]], axis=0)   # [2B, GP]
        for t in range(T)
    ]

    # Row-selector for the block-structured recurrent matmul (hoisted).
    is_fwd = lax.broadcasted_iota(jnp.int32, (2 * B, GP), 0) < B    # [2B, GP] bool

    # --- fused forward+backward GRU recurrence: one matmul per step ----------
    # h rows 0:B carry the forward hidden state, rows B:2B the backward one;
    # lanes H:HP are structural zeros (kept zero by the gate math).
    h = jnp.zeros((2 * B, HP), jnp.float32)
    hs = []
    for t in range(T):
        gh2 = jnp.dot(h[:, 0:H], wh,
                      preferred_element_type=jnp.float32)           # [2B, 2*GP]
        gh = jnp.where(is_fwd, gh2[:, 0:GP], gh2[:, GP:2 * GP]) + bh
        g = gx_steps[t]
        # PyTorch gate ordering: r, z, n — each at a 128-lane-aligned block.
        r = jax.nn.sigmoid(g[:, 0:HP] + gh[:, 0:HP])
        z = jax.nn.sigmoid(g[:, HP:2 * HP] + gh[:, HP:2 * HP])
        n = jnp.tanh(g[:, 2 * HP:3 * HP] + r * gh[:, 2 * HP:3 * HP])
        h = (1.0 - z) * n + z * h
        hs.append(h)

    # --- hidden2tag: assemble time-major slabs in registers, two matmuls -----
    hf = jnp.concatenate([hs[t][0:B, :] for t in range(T)], axis=0)          # [T*B, HP]
    hb = jnp.concatenate([hs[T - 1 - t][B:2 * B, :] for t in range(T)], axis=0)
    emissions = (jnp.dot(hf[:, 0:H], wout_f, preferred_element_type=jnp.float32)
                 + jnp.dot(hb[:, 0:H], wout_b, preferred_element_type=jnp.float32)
                 + bout)                                                      # [T*B, KP]
    em_ref[...] = emissions          # lane-dense (unmasked) output store

    # --- CRF negative log-likelihood (torchcrf, reduction='sum') -------------
    emK = emissions[:, 0:K]                           # [T*B, K]
    lab = lab_ref[...]                                # [T*B, K] one-hot labels

    # Gold-path score: label-only work, fully vectorized / off the serial chain.
    em_gold = jnp.sum(emK * lab)
    start_gold = jnp.sum(start * lab[0:B, :])
    end_gold = jnp.sum(end * lab[(T - 1) * B:T * B, :])
    trans_gold = jnp.sum(
        jnp.dot(lab[0:(T - 1) * B, :], trans,
                preferred_element_type=jnp.float32) * lab[B:T * B, :])
    gold_score = em_gold + start_gold + end_gold + trans_gold

    # Log-partition: the only serial recursion. Broadcasts / emission slices
    # are hoisted; per-step work is a stabilized VPU/XLU/EUP logsumexp.
    trans_b = jnp.broadcast_to(trans[None, :, :], (B, K, K))     # hoisted once
    em_steps = [emK[t * B:(t + 1) * B, :] for t in range(T)]     # hoisted slices
    alpha = start + em_steps[0]                                  # [B, K]
    for t in range(1, T):
        cand = alpha[:, :, None] + trans_b                       # [B, Kprev, Knext]
        m = jnp.max(cand, axis=1, keepdims=True)                 # [B, 1, K]
        alpha = (m[:, 0, :]
                 + jnp.log(jnp.sum(jnp.exp(cand - m), axis=1))
                 + em_steps[t])
    alpha = alpha + end
    m2 = jnp.max(alpha, axis=-1, keepdims=True)
    log_z = jnp.sum(m2 + jnp.log(jnp.sum(jnp.exp(alpha - m2), axis=-1,
                                         keepdims=True)))

    loss_ref[0, 0] = log_z - gold_score      # -sum_b log-likelihood


def fused_gru_crf(x_flat, lab_flat, packed_params):
    vmem = pl.BlockSpec(memory_space=pltpu.MemorySpace.VMEM)
    smem = pl.BlockSpec(memory_space=pltpu.MemorySpace.SMEM)
    # TODO(synk): for production batch/sequence sizes add a batch grid axis with
    # dimension_semantics=("parallel",) so v7x's second TensorCore is used.
    em_pad, loss = pl.pallas_call(
        _fused_gru_crf_kernel,
        out_shape=(jax.ShapeDtypeStruct((SEQ * BATCH, KP), jnp.float32),
                   jax.ShapeDtypeStruct((1, 1), jnp.float32)),
        in_specs=[vmem, vmem, vmem],
        out_specs=(vmem, smem),
    )(x_flat, lab_flat, packed_params)
    return em_pad, loss


# ----------------------------------------------------------------------------
# Viterbi decode — plain JAX glue (tiny tag-dim backtracking, not the hot path)
# TODO(synk): could be fused into the kernel to drop the second dispatch.
# ----------------------------------------------------------------------------
def crf_decode(emissions, crf_params):
    trans = crf_params["trans"]
    start = crf_params["start"][0]
    end = crf_params["end"][0]
    score0 = start[None, :] + emissions[0]                 # [B, K]

    def step(score, e_t):
        cand = score[:, :, None] + trans[None, :, :]       # [B, Kprev, Knext]
        best_prev = jnp.argmax(cand, axis=1)
        new_score = jnp.max(cand, axis=1) + e_t
        return new_score, best_prev

    final_score, backptrs = lax.scan(step, score0, emissions[1:])
    final_score = final_score + end[None, :]
    best_last = jnp.argmax(final_score, axis=-1)           # [B]
    best_score = jnp.max(final_score, axis=-1)             # [B]

    def back_step(tag, bp_t):
        prev = jnp.take_along_axis(bp_t, tag[:, None], axis=-1)[:, 0]
        return prev, prev

    _, ys = lax.scan(back_step, best_last, backptrs, reverse=True)
    tags = jnp.concatenate([ys, best_last[None, :]], axis=0)   # [T, B]
    return best_score, tags


# ----------------------------------------------------------------------------
# Parameters, host-side parameter packing, full forward pass
# ----------------------------------------------------------------------------
def init_params(key):
    ks = jax.random.split(key, 16)
    u = lambda k, shape, s=0.1: jax.random.uniform(k, shape, jnp.float32, -s, s)
    params = dict(
        emb=u(ks[0], (VOCAB, INPUT_SIZE), 0.5),
        wi_f=u(ks[1], (INPUT_SIZE, 3 * H)), wh_f=u(ks[2], (H, 3 * H)),
        bi_f=u(ks[3], (1, 3 * H)),          bh_f=u(ks[4], (1, 3 * H)),
        wi_b=u(ks[5], (INPUT_SIZE, 3 * H)), wh_b=u(ks[6], (H, 3 * H)),
        bi_b=u(ks[7], (1, 3 * H)),          bh_b=u(ks[8], (1, 3 * H)),
        wout_f=u(ks[9], (H, NUM_TAGS)),     wout_b=u(ks[10], (H, NUM_TAGS)),
        bout=u(ks[11], (1, NUM_TAGS)),
    )
    crf_params = dict(
        trans=u(ks[12], (NUM_TAGS, NUM_TAGS)),
        start=u(ks[13], (1, NUM_TAGS)),
        end=u(ks[14], (1, NUM_TAGS)),
    )
    return params, crf_params


def pack_params(params, crf_params):
    """Pack all small parameter tensors into one [PACK_ROWS, PACK_COLS] slab
    (done once, outside the kernel) with each GRU gate lane-padded to 128."""
    B = BATCH

    def pad_gates(w):
        # w: [rows, 3*H] (PyTorch gate order r,z,n) -> [rows, GP] with gate g
        # occupying lanes [g*HP, g*HP + H).
        out = jnp.zeros((w.shape[0], GP), jnp.float32)
        for g in range(3):
            out = out.at[:, g * HP:g * HP + H].set(w[:, g * H:(g + 1) * H])
        return out

    wi = jnp.concatenate([pad_gates(params["wi_f"]), pad_gates(params["wi_b"])], axis=1)
    wh = jnp.concatenate([pad_gates(params["wh_f"]), pad_gates(params["wh_b"])], axis=1)
    bi = jnp.concatenate([pad_gates(params["bi_f"]), pad_gates(params["bi_b"])], axis=1)
    bh = jnp.concatenate(
        [jnp.broadcast_to(pad_gates(params["bh_f"]), (B, GP)),
         jnp.broadcast_to(pad_gates(params["bh_b"]), (B, GP))], axis=0)      # [2B, GP]
    wout_f = jnp.zeros((H, KP), jnp.float32).at[:, :K].set(params["wout_f"])
    wout_b = jnp.zeros((H, KP), jnp.float32).at[:, :K].set(params["wout_b"])
    bout = jnp.zeros((1, KP), jnp.float32).at[:, :K].set(params["bout"])

    buf = jnp.zeros((PACK_ROWS, PACK_COLS), jnp.float32)
    buf = buf.at[R_WI:R_WI + D, :].set(wi)
    buf = buf.at[R_WH:R_WH + H, :].set(wh)
    buf = buf.at[R_WOUT:R_WOUT + H, 0:KP].set(wout_f)
    buf = buf.at[R_WOUT:R_WOUT + H, KP:2 * KP].set(wout_b)
    buf = buf.at[R_BI, :].set(bi[0])
    buf = buf.at[R_BOUT, 0:KP].set(bout[0])
    buf = buf.at[R_BH:R_BH + 2 * B, 0:GP].set(bh)
    buf = buf.at[R_START, 0:K].set(crf_params["start"][0])
    buf = buf.at[R_END, 0:K].set(crf_params["end"][0])
    buf = buf.at[R_TRANS:R_TRANS + K, 0:K].set(crf_params["trans"])
    return buf


def model_forward(emb, packed_params, crf_params, word_ids, labels):
    # wordrepr: embedding lookup (glue).  word_ids [B, T] -> [B, T, D]
    word_represent = jnp.take(emb, word_ids, axis=0)
    x_flat = jnp.transpose(word_represent, (1, 0, 2)).reshape(SEQ * BATCH, D)
    # labels.transpose(1, 0) -> [T, B]; one-hot for in-kernel gathers
    labels_tb = jnp.transpose(labels, (1, 0))
    lab_flat = jax.nn.one_hot(labels_tb, K, dtype=jnp.float32).reshape(SEQ * BATCH, K)
    # TODO(synk): nn.Dropout(opt.dropout) is identity at inference; training-time
    # dropout masking is not modeled here.
    # TODO(synk): full-length sequences assumed (CRF mask == all ones); padded
    # variable-length batches are not modeled.
    em_pad, loss = fused_gru_crf(x_flat, lab_flat, packed_params)
    outputs = em_pad[:, :K].reshape(SEQ, BATCH, K)          # [T, B, K]
    assert outputs.shape[2] == NUM_TAGS                     # len(tag_vocab)
    score, result = crf_decode(outputs, crf_params)         # crf.decode(outputs)
    return loss[0, 0], score, result


if __name__ == "__main__":
    key = jax.random.PRNGKey(0)
    k_par, k_ids, k_lab = jax.random.split(key, 3)
    params, crf_params = init_params(k_par)
    packed = pack_params(params, crf_params)                # one-time host-side pack
    word_ids = jax.random.randint(k_ids, (BATCH, SEQ), 0, VOCAB, dtype=jnp.int32)
    labels = jax.random.randint(k_lab, (BATCH, SEQ), 0, NUM_TAGS, dtype=jnp.int32)

    loss, score, result = jax.jit(model_forward)(
        params["emb"], packed, crf_params, word_ids, labels)
    jax.block_until_ready((loss, score, result))
    print("KERNEL_OK")
</pallas_src>

<mosaic_0001>
module attributes {stable_mosaic.version = 11 : i64} {
  func.func @_fused_gru_crf_kernel(%arg0: memref<16x16xf32, #tpu.memory_space<vmem>>, %arg1: memref<16x5xf32, #tpu.memory_space<vmem>>, %arg2: memref<64x768xf32, #tpu.memory_space<vmem>>, %arg3: memref<16x128xf32, #tpu.memory_space<vmem>>, %arg4: memref<1x1xf32, #tpu.memory_space<smem>>) attributes {dimension_semantics = [], scalar_prefetch = 0 : i64, scratch_operands = 0 : i64, tpu.core_type = #tpu.core_type<tc>} {
    %c0 = arith.constant 0 : index
    %c0_0 = arith.constant 0 : index
    %0 = vector.load %arg2[%c0, %c0_0] : memref<64x768xf32, #tpu.memory_space<vmem>>, vector<16x768xf32>
    %c16 = arith.constant 16 : index
    %c0_1 = arith.constant 0 : index
    %1 = vector.load %arg2[%c16, %c0_1] : memref<64x768xf32, #tpu.memory_space<vmem>>, vector<16x768xf32>
    %c32 = arith.constant 32 : index
    %c0_2 = arith.constant 0 : index
    %2 = vector.load %arg2[%c32, %c0_2] : memref<64x768xf32, #tpu.memory_space<vmem>>, vector<16x128xf32>
    %c32_3 = arith.constant 32 : index
    %c128 = arith.constant 128 : index
    %3 = vector.load %arg2[%c32_3, %c128] : memref<64x768xf32, #tpu.memory_space<vmem>>, vector<16x128xf32>
    %c48 = arith.constant 48 : index
    %c0_4 = arith.constant 0 : index
    %4 = vector.load %arg2[%c48, %c0_4] : memref<64x768xf32, #tpu.memory_space<vmem>>, vector<1x768xf32>
    %c49 = arith.constant 49 : index
    %c0_5 = arith.constant 0 : index
    %5 = vector.load %arg2[%c49, %c0_5] : memref<64x768xf32, #tpu.memory_space<vmem>>, vector<1x128xf32>
    %c50 = arith.constant 50 : index
    %c0_6 = arith.constant 0 : index
    %6 = vector.load %arg2[%c50, %c0_6] : memref<64x768xf32, #tpu.memory_space<vmem>>, vector<4x384xf32>
    %c54 = arith.constant 54 : index
    %c0_7 = arith.constant 0 : index
    %7 = vector.load %arg2[%c54, %c0_7] : memref<64x768xf32, #tpu.memory_space<vmem>>, vector<1x5xf32>
    %c55 = arith.constant 55 : index
    %c0_8 = arith.constant 0 : index
    %8 = vector.load %arg2[%c55, %c0_8] : memref<64x768xf32, #tpu.memory_space<vmem>>, vector<1x5xf32>
    %c56 = arith.constant 56 : index
    %c0_9 = arith.constant 0 : index
    %9 = vector.load %arg2[%c56, %c0_9] : memref<64x768xf32, #tpu.memory_space<vmem>>, vector<5x5xf32>
    %c0_10 = arith.constant 0 : index
    %c0_11 = arith.constant 0 : index
    %10 = vector.load %arg0[%c0_10, %c0_11] : memref<16x16xf32, #tpu.memory_space<vmem>>, vector<16x16xf32>
    %cst = arith.constant dense<0.000000e+00> : vector<16x768xf32>
    %11 = tpu.matmul %10, %0, %cst {dimension_numbers = #tpu.dot_dimension_numbers<[1], [0], [0], [1], [0, 0, 1, 1], [], []>} : vector<16x16xf32>, vector<16x768xf32>, vector<16x768xf32> -> vector<16x768xf32>
    %12 = vector.broadcast %4 : vector<1x768xf32> to vector<16x768xf32>
    %13 = arith.addf %11, %12 : vector<16x768xf32>
    %14 = vector.extract_strided_slice %13 {offsets = [0, 0], sizes = [2, 384], strides = [1, 1]} : vector<16x768xf32> to vector<2x384xf32>
    %15 = vector.extract_strided_slice %13 {offsets = [14, 384], sizes = [2, 384], strides = [1, 1]} : vector<16x768xf32> to vector<2x384xf32>
    %16 = tpu.concatenate %14, %15 in 0 : vector<2x384xf32>, vector<2x384xf32> -> vector<4x384xf32>
    %17 = vector.extract_strided_slice %13 {offsets = [2, 0], sizes = [2, 384], strides = [1, 1]} : vector<16x768xf32> to vector<2x384xf32>
    %18 = vector.extract_strided_slice %13 {offsets = [12, 384], sizes = [2, 384], strides = [1, 1]} : vector<16x768xf32> to vector<2x384xf32>
    %19 = tpu.concatenate %17, %18 in 0 : vector<2x384xf32>, vector<2x384xf32> -> vector<4x384xf32>
    %20 = vector.extract_strided_slice %13 {offsets = [4, 0], sizes = [2, 384], strides = [1, 1]} : vector<16x768xf32> to vector<2x384xf32>
    %21 = vector.extract_strided_slice %13 {offsets = [10, 384], sizes = [2, 384], strides = [1, 1]} : vector<16x768xf32> to vector<2x384xf32>
    %22 = tpu.concatenate %20, %21 in 0 : vector<2x384xf32>, vector<2x384xf32> -> vector<4x384xf32>
    %23 = vector.extract_strided_slice %13 {offsets = [6, 0], sizes = [2, 384], strides = [1, 1]} : vector<16x768xf32> to vector<2x384xf32>
    %24 = vector.extract_strided_slice %13 {offsets = [8, 384], sizes = [2, 384], strides = [1, 1]} : vector<16x768xf32> to vector<2x384xf32>
    %25 = tpu.concatenate %23, %24 in 0 : vector<2x384xf32>, vector<2x384xf32> -> vector<4x384xf32>
    %26 = vector.extract_strided_slice %13 {offsets = [8, 0], sizes = [2, 384], strides = [1, 1]} : vector<16x768xf32> to vector<2x384xf32>
    %27 = vector.extract_strided_slice %13 {offsets = [6, 384], sizes = [2, 384], strides = [1, 1]} : vector<16x768xf32> to vector<2x384xf32>
    %28 = tpu.concatenate %26, %27 in 0 : vector<2x384xf32>, vector<2x384xf32> -> vector<4x384xf32>
    %29 = vector.extract_strided_slice %13 {offsets = [10, 0], sizes = [2, 384], strides = [1, 1]} : vector<16x768xf32> to vector<2x384xf32>
    %30 = vector.extract_strided_slice %13 {offsets = [4, 384], sizes = [2, 384], strides = [1, 1]} : vector<16x768xf32> to vector<2x384xf32>
    %31 = tpu.concatenate %29, %30 in 0 : vector<2x384xf32>, vector<2x384xf32> -> vector<4x384xf32>
    %32 = vector.extract_strided_slice %13 {offsets = [12, 0], sizes = [2, 384], strides = [1, 1]} : vector<16x768xf32> to vector<2x384xf32>
    %33 = vector.extract_strided_slice %13 {offsets = [2, 384], sizes = [2, 384], strides = [1, 1]} : vector<16x768xf32> to vector<2x384xf32>
    %34 = tpu.concatenate %32, %33 in 0 : vector<2x384xf32>, vector<2x384xf32> -> vector<4x384xf32>
    %35 = vector.extract_strided_slice %13 {offsets = [14, 0], sizes = [2, 384], strides = [1, 1]} : vector<16x768xf32> to vector<2x384xf32>
    %36 = vector.extract_strided_slice %13 {offsets = [0, 384], sizes = [2, 384], strides = [1, 1]} : vector<16x768xf32> to vector<2x384xf32>
    %37 = tpu.concatenate %35, %36 in 0 : vector<2x384xf32>, vector<2x384xf32> -> vector<4x384xf32>
    %38 = tpu.iota {dimensions = array<i32: 0>} : vector<4x384xi32>
    %c2_i32 = arith.constant 2 : i32
    %39 = vector.broadcast %c2_i32 : i32 to vector<4x384xi32>
    %40 = arith.cmpi slt, %38, %39 : vector<4x384xi32>
    %cst_12 = arith.constant 0.000000e+00 : f32
    %41 = vector.broadcast %cst_12 : f32 to vector<4x128xf32>
    %42 = vector.extract_strided_slice %41 {offsets = [0, 0], sizes = [4, 16], strides = [1, 1]} : vector<4x128xf32> to vector<4x16xf32>
    %cst_13 = arith.constant dense<0.000000e+00> : vector<4x768xf32>
    %43 = tpu.matmul %42, %1, %cst_13 {dimension_numbers = #tpu.dot_dimension_numbers<[1], [0], [0], [1], [0, 0, 1, 1], [], []>} : vector<4x16xf32>, vector<16x768xf32>, vector<4x768xf32> -> vector<4x768xf32>
    %44 = vector.extract_strided_slice %43 {offsets = [0, 0], sizes = [4, 384], strides = [1, 1]} : vector<4x768xf32> to vector<4x384xf32>
    %45 = vector.extract_strided_slice %43 {offsets = [0, 384], sizes = [4, 384], strides = [1, 1]} : vector<4x768xf32> to vector<4x384xf32>
    %46 = arith.select %40, %44, %45 : vector<4x384xi1>, vector<4x384xf32>
    %47 = arith.addf %46, %6 : vector<4x384xf32>
    %48 = vector.extract_strided_slice %16 {offsets = [0, 0], sizes = [4, 128], strides = [1, 1]} : vector<4x384xf32> to vector<4x128xf32>
    %49 = vector.extract_strided_slice %47 {offsets = [0, 0], sizes = [4, 128], strides = [1, 1]} : vector<4x384xf32> to vector<4x128xf32>
    %50 = arith.addf %48, %49 : vector<4x128xf32>
    %51 = arith.negf %50 : vector<4x128xf32>
    %52 = math.exp %51 : vector<4x128xf32>
    %cst_14 = arith.constant 1.000000e+00 : f32
    %53 = vector.broadcast %cst_14 : f32 to vector<4x128xf32>
    %54 = arith.addf %53, %52 : vector<4x128xf32>
    %55 = arith.divf %53, %54 : vector<4x128xf32>
    %56 = vector.extract_strided_slice %16 {offsets = [0, 128], sizes = [4, 128], strides = [1, 1]} : vector<4x384xf32> to vector<4x128xf32>
    %57 = vector.extract_strided_slice %47 {offsets = [0, 128], sizes = [4, 128], strides = [1, 1]} : vector<4x384xf32> to vector<4x128xf32>
    %58 = arith.addf %56, %57 : vector<4x128xf32>
    %59 = arith.negf %58 : vector<4x128xf32>
    %60 = math.exp %59 : vector<4x128xf32>
    %cst_15 = arith.constant 1.000000e+00 : f32
    %61 = vector.broadcast %cst_15 : f32 to vector<4x128xf32>
    %62 = arith.addf %61, %60 : vector<4x128xf32>
    %63 = arith.divf %61, %62 : vector<4x128xf32>
    %64 = vector.extract_strided_slice %16 {offsets = [0, 256], sizes = [4, 128], strides = [1, 1]} : vector<4x384xf32> to vector<4x128xf32>
    %65 = vector.extract_strided_slice %47 {offsets = [0, 256], sizes = [4, 128], strides = [1, 1]} : vector<4x384xf32> to vector<4x128xf32>
    %66 = arith.mulf %55, %65 : vector<4x128xf32>
    %67 = arith.addf %64, %66 : vector<4x128xf32>
    %68 = math.tanh %67 : vector<4x128xf32>
    %cst_16 = arith.constant 1.000000e+00 : f32
    %69 = vector.broadcast %cst_16 : f32 to vector<4x128xf32>
    %70 = arith.subf %69, %63 : vector<4x128xf32>
    %71 = arith.mulf %70, %68 : vector<4x128xf32>
    %72 = arith.mulf %63, %41 : vector<4x128xf32>
    %73 = arith.addf %71, %72 : vector<4x128xf32>
    %74 = vector.extract_strided_slice %73 {offsets = [0, 0], sizes = [4, 16], strides = [1, 1]} : vector<4x128xf32> to vector<4x16xf32>
    %cst_17 = arith.constant dense<0.000000e+00> : vector<4x768xf32>
    %75 = tpu.matmul %74, %1, %cst_17 {dimension_numbers = #tpu.dot_dimension_numbers<[1], [0], [0], [1], [0, 0, 1, 1], [], []>} : vector<4x16xf32>, vector<16x768xf32>, vector<4x768xf32> -> vector<4x768xf32>
    %76 = vector.extract_strided_slice %75 {offsets = [0, 0], sizes = [4, 384], strides = [1, 1]} : vector<4x768xf32> to vector<4x384xf32>
    %77 = vector.extract_strided_slice %75 {offsets = [0, 384], sizes = [4, 384], strides = [1, 1]} : vector<4x768xf32> to vector<4x384xf32>
    %78 = arith.select %40, %76, %77 : vector<4x384xi1>, vector<4x384xf32>
    %79 = arith.addf %78, %6 : vector<4x384xf32>
    %80 = vector.extract_strided_slice %19 {offsets = [0, 0], sizes = [4, 128], strides = [1, 1]} : vector<4x384xf32> to vector<4x128xf32>
    %81 = vector.extract_strided_slice %79 {offsets = [0, 0], sizes = [4, 128], strides = [1, 1]} : vector<4x384xf32> to vector<4x128xf32>
    %82 = arith.addf %80, %81 : vector<4x128xf32>
    %83 = arith.negf %82 : vector<4x128xf32>
    %84 = math.exp %83 : vector<4x128xf32>
    %cst_18 = arith.constant 1.000000e+00 : f32
    %85 = vector.broadcast %cst_18 : f32 to vector<4x128xf32>
    %86 = arith.addf %85, %84 : vector<4x128xf32>
    %87 = arith.divf %85, %86 : vector<4x128xf32>
    %88 = vector.extract_strided_slice %19 {offsets = [0, 128], sizes = [4, 128], strides = [1, 1]} : vector<4x384xf32> to vector<4x128xf32>
    %89 = vector.extract_strided_slice %79 {offsets = [0, 128], sizes = [4, 128], strides = [1, 1]} : vector<4x384xf32> to vector<4x128xf32>
    %90 = arith.addf %88, %89 : vector<4x128xf32>
    %91 = arith.negf %90 : vector<4x128xf32>
    %92 = math.exp %91 : vector<4x128xf32>
    %cst_19 = arith.constant 1.000000e+00 : f32
    %93 = vector.broadcast %cst_19 : f32 to vector<4x128xf32>
    %94 = arith.addf %93, %92 : vector<4x128xf32>
    %95 = arith.divf %93, %94 : vector<4x128xf32>
    %96 = vector.extract_strided_slice %19 {offsets = [0, 256], sizes = [4, 128], strides = [1, 1]} : vector<4x384xf32> to vector<4x128xf32>
    %97 = vector.extract_strided_slice %79 {offsets = [0, 256], sizes = [4, 128], strides = [1, 1]} : vector<4x384xf32> to vector<4x128xf32>
    %98 = arith.mulf %87, %97 : vector<4x128xf32>
    %99 = arith.addf %96, %98 : vector<4x128xf32>
    %100 = math.tanh %99 : vector<4x128xf32>
    %cst_20 = arith.constant 1.000000e+00 : f32
    %101 = vector.broadcast %cst_20 : f32 to vector<4x128xf32>
    %102 = arith.subf %101, %95 : vector<4x128xf32>
    %103 = arith.mulf %102, %100 : vector<4x128xf32>
    %104 = arith.mulf %95, %73 : vector<4x128xf32>
    %105 = arith.addf %103, %104 : vector<4x128xf32>
    %106 = vector.extract_strided_slice %105 {offsets = [0, 0], sizes = [4, 16], strides = [1, 1]} : vector<4x128xf32> to vector<4x16xf32>
    %cst_21 = arith.constant dense<0.000000e+00> : vector<4x768xf32>
    %107 = tpu.matmul %106, %1, %cst_21 {dimension_numbers = #tpu.dot_dimension_numbers<[1], [0], [0], [1], [0, 0, 1, 1], [], []>} : vector<4x16xf32>, vector<16x768xf32>, vector<4x768xf32> -> vector<4x768xf32>
    %108 = vector.extract_strided_slice %107 {offsets = [0, 0], sizes = [4, 384], strides = [1, 1]} : vector<4x768xf32> to vector<4x384xf32>
    %109 = vector.extract_strided_slice %107 {offsets = [0, 384], sizes = [4, 384], strides = [1, 1]} : vector<4x768xf32> to vector<4x384xf32>
    %110 = arith.select %40, %108, %109 : vector<4x384xi1>, vector<4x384xf32>
    %111 = arith.addf %110, %6 : vector<4x384xf32>
    %112 = vector.extract_strided_slice %22 {offsets = [0, 0], sizes = [4, 128], strides = [1, 1]} : vector<4x384xf32> to vector<4x128xf32>
    %113 = vector.extract_strided_slice %111 {offsets = [0, 0], sizes = [4, 128], strides = [1, 1]} : vector<4x384xf32> to vector<4x128xf32>
    %114 = arith.addf %112, %113 : vector<4x128xf32>
    %115 = arith.negf %114 : vector<4x128xf32>
    %116 = math.exp %115 : vector<4x128xf32>
    %cst_22 = arith.constant 1.000000e+00 : f32
    %117 = vector.broadcast %cst_22 : f32 to vector<4x128xf32>
    %118 = arith.addf %117, %116 : vector<4x128xf32>
    %119 = arith.divf %117, %118 : vector<4x128xf32>
    %120 = vector.extract_strided_slice %22 {offsets = [0, 128], sizes = [4, 128], strides = [1, 1]} : vector<4x384xf32> to vector<4x128xf32>
    %121 = vector.extract_strided_slice %111 {offsets = [0, 128], sizes = [4, 128], strides = [1, 1]} : vector<4x384xf32> to vector<4x128xf32>
    %122 = arith.addf %120, %121 : vector<4x128xf32>
    %123 = arith.negf %122 : vector<4x128xf32>
    %124 = math.exp %123 : vector<4x128xf32>
    %cst_23 = arith.constant 1.000000e+00 : f32
    %125 = vector.broadcast %cst_23 : f32 to vector<4x128xf32>
    %126 = arith.addf %125, %124 : vector<4x128xf32>
    %127 = arith.divf %125, %126 : vector<4x128xf32>
    %128 = vector.extract_strided_slice %22 {offsets = [0, 256], sizes = [4, 128], strides = [1, 1]} : vector<4x384xf32> to vector<4x128xf32>
    %129 = vector.extract_strided_slice %111 {offsets = [0, 256], sizes = [4, 128], strides = [1, 1]} : vector<4x384xf32> to vector<4x128xf32>
    %130 = arith.mulf %119, %129 : vector<4x128xf32>
    %131 = arith.addf %128, %130 : vector<4x128xf32>
    %132 = math.tanh %131 : vector<4x128xf32>
    %cst_24 = arith.constant 1.000000e+00 : f32
    %133 = vector.broadcast %cst_24 : f32 to vector<4x128xf32>
    %134 = arith.subf %133, %127 : vector<4x128xf32>
    %135 = arith.mulf %134, %132 : vector<4x128xf32>
    %136 = arith.mulf %127, %105 : vector<4x128xf32>
    %137 = arith.addf %135, %136 : vector<4x128xf32>
    %138 = vector.extract_strided_slice %137 {offsets = [0, 0], sizes = [4, 16], strides = [1, 1]} : vector<4x128xf32> to vector<4x16xf32>
    %cst_25 = arith.constant dense<0.000000e+00> : vector<4x768xf32>
    %139 = tpu.matmul %138, %1, %cst_25 {dimension_numbers = #tpu.dot_dimension_numbers<[1], [0], [0], [1], [0, 0, 1, 1], [], []>} : vector<4x16xf32>, vector<16x768xf32>, vector<4x768xf32> -> vector<4x768xf32>
    %140 = vector.extract_strided_slice %139 {offsets = [0, 0], sizes = [4, 384], strides = [1, 1]} : vector<4x768xf32> to vector<4x384xf32>
    %141 = vector.extract_strided_slice %139 {offsets = [0, 384], sizes = [4, 384], strides = [1, 1]} : vector<4x768xf32> to vector<4x384xf32>
    %142 = arith.select %40, %140, %141 : vector<4x384xi1>, vector<4x384xf32>
    %143 = arith.addf %142, %6 : vector<4x384xf32>
    %144 = vector.extract_strided_slice %25 {offsets = [0, 0], sizes = [4, 128], strides = [1, 1]} : vector<4x384xf32> to vector<4x128xf32>
    %145 = vector.extract_strided_slice %143 {offsets = [0, 0], sizes = [4, 128], strides = [1, 1]} : vector<4x384xf32> to vector<4x128xf32>
    %146 = arith.addf %144, %145 : vector<4x128xf32>
    %147 = arith.negf %146 : vector<4x128xf32>
    %148 = math.exp %147 : vector<4x128xf32>
    %cst_26 = arith.constant 1.000000e+00 : f32
    %149 = vector.broadcast %cst_26 : f32 to vector<4x128xf32>
    %150 = arith.addf %149, %148 : vector<4x128xf32>
    %151 = arith.divf %149, %150 : vector<4x128xf32>
    %152 = vector.extract_strided_slice %25 {offsets = [0, 128], sizes = [4, 128], strides = [1, 1]} : vector<4x384xf32> to vector<4x128xf32>
    %153 = vector.extract_strided_slice %143 {offsets = [0, 128], sizes = [4, 128], strides = [1, 1]} : vector<4x384xf32> to vector<4x128xf32>
    %154 = arith.addf %152, %153 : vector<4x128xf32>
    %155 = arith.negf %154 : vector<4x128xf32>
    %156 = math.exp %155 : vector<4x128xf32>
    %cst_27 = arith.constant 1.000000e+00 : f32
    %157 = vector.broadcast %cst_27 : f32 to vector<4x128xf32>
    %158 = arith.addf %157, %156 : vector<4x128xf32>
    %159 = arith.divf %157, %158 : vector<4x128xf32>
    %160 = vector.extract_strided_slice %25 {offsets = [0, 256], sizes = [4, 128], strides = [1, 1]} : vector<4x384xf32> to vector<4x128xf32>
    %161 = vector.extract_strided_slice %143 {offsets = [0, 256], sizes = [4, 128], strides = [1, 1]} : vector<4x384xf32> to vector<4x128xf32>
    %162 = arith.mulf %151, %161 : vector<4x128xf32>
    %163 = arith.addf %160, %162 : vector<4x128xf32>
    %164 = math.tanh %163 : vector<4x128xf32>
    %cst_28 = arith.constant 1.000000e+00 : f32
    %165 = vector.broadcast %cst_28 : f32 to vector<4x128xf32>
    %166 = arith.subf %165, %159 : vector<4x128xf32>
    %167 = arith.mulf %166, %164 : vector<4x128xf32>
    %168 = arith.mulf %159, %137 : vector<4x128xf32>
    %169 = arith.addf %167, %168 : vector<4x128xf32>
    %170 = vector.extract_strided_slice %169 {offsets = [0, 0], sizes = [4, 16], strides = [1, 1]} : vector<4x128xf32> to vector<4x16xf32>
    %cst_29 = arith.constant dense<0.000000e+00> : vector<4x768xf32>
    %171 = tpu.matmul %170, %1, %cst_29 {dimension_numbers = #tpu.dot_dimension_numbers<[1], [0], [0], [1], [0, 0, 1, 1], [], []>} : vector<4x16xf32>, vector<16x768xf32>, vector<4x768xf32> -> vector<4x768xf32>
    %172 = vector.extract_strided_slice %171 {offsets = [0, 0], sizes = [4, 384], strides = [1, 1]} : vector<4x768xf32> to vector<4x384xf32>
    %173 = vector.extract_strided_slice %171 {offsets = [0, 384], sizes = [4, 384], strides = [1, 1]} : vector<4x768xf32> to vector<4x384xf32>
    %174 = arith.select %40, %172, %173 : vector<4x384xi1>, vector<4x384xf32>
    %175 = arith.addf %174, %6 : vector<4x384xf32>
    %176 = vector.extract_strided_slice %28 {offsets = [0, 0], sizes = [4, 128], strides = [1, 1]} : vector<4x384xf32> to vector<4x128xf32>
    %177 = vector.extract_strided_slice %175 {offsets = [0, 0], sizes = [4, 128], strides = [1, 1]} : vector<4x384xf32> to vector<4x128xf32>
    %178 = arith.addf %176, %177 : vector<4x128xf32>
    %179 = arith.negf %178 : vector<4x128xf32>
    %180 = math.exp %179 : vector<4x128xf32>
    %cst_30 = arith.constant 1.000000e+00 : f32
    %181 = vector.broadcast %cst_30 : f32 to vector<4x128xf32>
    %182 = arith.addf %181, %180 : vector<4x128xf32>
    %183 = arith.divf %181, %182 : vector<4x128xf32>
    %184 = vector.extract_strided_slice %28 {offsets = [0, 128], sizes = [4, 128], strides = [1, 1]} : vector<4x384xf32> to vector<4x128xf32>
    %185 = vector.extract_strided_slice %175 {offsets = [0, 128], sizes = [4, 128], strides = [1, 1]} : vector<4x384xf32> to vector<4x128xf32>
    %186 = arith.addf %184, %185 : vector<4x128xf32>
    %187 = arith.negf %186 : vector<4x128xf32>
    %188 = math.exp %187 : vector<4x128xf32>
    %cst_31 = arith.constant 1.000000e+00 : f32
    %189 = vector.broadcast %cst_31 : f32 to vector<4x128xf32>
    %190 = arith.addf %189, %188 : vector<4x128xf32>
    %191 = arith.divf %189, %190 : vector<4x128xf32>
    %192 = vector.extract_strided_slice %28 {offsets = [0, 256], sizes = [4, 128], strides = [1, 1]} : vector<4x384xf32> to vector<4x128xf32>
    %193 = vector.extract_strided_slice %175 {offsets = [0, 256], sizes = [4, 128], strides = [1, 1]} : vector<4x384xf32> to vector<4x128xf32>
    %194 = arith.mulf %183, %193 : vector<4x128xf32>
    %195 = arith.addf %192, %194 : vector<4x128xf32>
    %196 = math.tanh %195 : vector<4x128xf32>
    %cst_32 = arith.constant 1.000000e+00 : f32
    %197 = vector.broadcast %cst_32 : f32 to vector<4x128xf32>
    %198 = arith.subf %197, %191 : vector<4x128xf32>
    %199 = arith.mulf %198, %196 : vector<4x128xf32>
    %200 = arith.mulf %191, %169 : vector<4x128xf32>
    %201 = arith.addf %199, %200 : vector<4x128xf32>
    %202 = vector.extract_strided_slice %201 {offsets = [0, 0], sizes = [4, 16], strides = [1, 1]} : vector<4x128xf32> to vector<4x16xf32>
    %cst_33 = arith.constant dense<0.000000e+00> : vector<4x768xf32>
    %203 = tpu.matmul %202, %1, %cst_33 {dimension_numbers = #tpu.dot_dimension_numbers<[1], [0], [0], [1], [0, 0, 1, 1], [], []>} : vector<4x16xf32>, vector<16x768xf32>, vector<4x768xf32> -> vector<4x768xf32>
    %204 = vector.extract_strided_slice %203 {offsets = [0, 0], sizes = [4, 384], strides = [1, 1]} : vector<4x768xf32> to vector<4x384xf32>
    %205 = vector.extract_strided_slice %203 {offsets = [0, 384], sizes = [4, 384], strides = [1, 1]} : vector<4x768xf32> to vector<4x384xf32>
    %206 = arith.select %40, %204, %205 : vector<4x384xi1>, vector<4x384xf32>
    %207 = arith.addf %206, %6 : vector<4x384xf32>
    %208 = vector.extract_strided_slice %31 {offsets = [0, 0], sizes = [4, 128], strides = [1, 1]} : vector<4x384xf32> to vector<4x128xf32>
    %209 = vector.extract_strided_slice %207 {offsets = [0, 0], sizes = [4, 128], strides = [1, 1]} : vector<4x384xf32> to vector<4x128xf32>
    %210 = arith.addf %208, %209 : vector<4x128xf32>
    %211 = arith.negf %210 : vector<4x128xf32>
    %212 = math.exp %211 : vector<4x128xf32>
    %cst_34 = arith.constant 1.000000e+00 : f32
    %213 = vector.broadcast %cst_34 : f32 to vector<4x128xf32>
    %214 = arith.addf %213, %212 : vector<4x128xf32>
    %215 = arith.divf %213, %214 : vector<4x128xf32>
    %216 = vector.extract_strided_slice %31 {offsets = [0, 128], sizes = [4, 128], strides = [1, 1]} : vector<4x384xf32> to vector<4x128xf32>
    %217 = vector.extract_strided_slice %207 {offsets = [0, 128], sizes = [4, 128], strides = [1, 1]} : vector<4x384xf32> to vector<4x128xf32>
    %218 = arith.addf %216, %217 : vector<4x128xf32>
    %219 = arith.negf %218 : vector<4x128xf32>
    %220 = math.exp %219 : vector<4x128xf32>
    %cst_35 = arith.constant 1.000000e+00 : f32
    %221 = vector.broadcast %cst_35 : f32 to vector<4x128xf32>
    %222 = arith.addf %221, %220 : vector<4x128xf32>
    %223 = arith.divf %221, %222 : vector<4x128xf32>
    %224 = vector.extract_strided_slice %31 {offsets = [0, 256], sizes = [4, 128], strides = [1, 1]} : vector<4x384xf32> to vector<4x128xf32>
    %225 = vector.extract_strided_slice %207 {offsets = [0, 256], sizes = [4, 128], strides = [1, 1]} : vector<4x384xf32> to vector<4x128xf32>
    %226 = arith.mulf %215, %225 : vector<4x128xf32>
    %227 = arith.addf %224, %226 : vector<4x128xf32>
    %228 = math.tanh %227 : vector<4x128xf32>
    %cst_36 = arith.constant 1.000000e+00 : f32
    %229 = vector.broadcast %cst_36 : f32 to vector<4x128xf32>
    %230 = arith.subf %229, %223 : vector<4x128xf32>
    %231 = arith.mulf %230, %228 : vector<4x128xf32>
    %232 = arith.mulf %223, %201 : vector<4x128xf32>
    %233 = arith.addf %231, %232 : vector<4x128xf32>
    %234 = vector.extract_strided_slice %233 {offsets = [0, 0], sizes = [4, 16], strides = [1, 1]} : vector<4x128xf32> to vector<4x16xf32>
    %cst_37 = arith.constant dense<0.000000e+00> : vector<4x768xf32>
    %235 = tpu.matmul %234, %1, %cst_37 {dimension_numbers = #tpu.dot_dimension_numbers<[1], [0], [0], [1], [0, 0, 1, 1], [], []>} : vector<4x16xf32>, vector<16x768xf32>, vector<4x768xf32> -> vector<4x768xf32>
    %236 = vector.extract_strided_slice %235 {offsets = [0, 0], sizes = [4, 384], strides = [1, 1]} : vector<4x768xf32> to vector<4x384xf32>
    %237 = vector.extract_strided_slice %235 {offsets = [0, 384], sizes = [4, 384], strides = [1, 1]} : vector<4x768xf32> to vector<4x384xf32>
    %238 = arith.select %40, %236, %237 : vector<4x384xi1>, vector<4x384xf32>
    %239 = arith.addf %238, %6 : vector<4x384xf32>
    %240 = vector.extract_strided_slice %34 {offsets = [0, 0], sizes = [4, 128], strides = [1, 1]} : vector<4x384xf32> to vector<4x128xf32>
    %241 = vector.extract_strided_slice %239 {offsets = [0, 0], sizes = [4, 128], strides = [1, 1]} : vector<4x384xf32> to vector<4x128xf32>
    %242 = arith.addf %240, %241 : vector<4x128xf32>
    %243 = arith.negf %242 : vector<4x128xf32>
    %244 = math.exp %243 : vector<4x128xf32>
    %cst_38 = arith.constant 1.000000e+00 : f32
    %245 = vector.broadcast %cst_38 : f32 to vector<4x128xf32>
    %246 = arith.addf %245, %244 : vector<4x128xf32>
    %247 = arith.divf %245, %246 : vector<4x128xf32>
    %248 = vector.extract_strided_slice %34 {offsets = [0, 128], sizes = [4, 128], strides = [1, 1]} : vector<4x384xf32> to vector<4x128xf32>
    %249 = vector.extract_strided_slice %239 {offsets = [0, 128], sizes = [4, 128], strides = [1, 1]} : vector<4x384xf32> to vector<4x128xf32>
    %250 = arith.addf %248, %249 : vector<4x128xf32>
    %251 = arith.negf %250 : vector<4x128xf32>
    %252 = math.exp %251 : vector<4x128xf32>
    %cst_39 = arith.constant 1.000000e+00 : f32
    %253 = vector.broadcast %cst_39 : f32 to vector<4x128xf32>
    %254 = arith.addf %253, %252 : vector<4x128xf32>
    %255 = arith.divf %253, %254 : vector<4x128xf32>
    %256 = vector.extract_strided_slice %34 {offsets = [0, 256], sizes = [4, 128], strides = [1, 1]} : vector<4x384xf32> to vector<4x128xf32>
    %257 = vector.extract_strided_slice %239 {offsets = [0, 256], sizes = [4, 128], strides = [1, 1]} : vector<4x384xf32> to vector<4x128xf32>
    %258 = arith.mulf %247, %257 : vector<4x128xf32>
    %259 = arith.addf %256, %258 : vector<4x128xf32>
    %260 = math.tanh %259 : vector<4x128xf32>
    %cst_40 = arith.constant 1.000000e+00 : f32
    %261 = vector.broadcast %cst_40 : f32 to vector<4x128xf32>
    %262 = arith.subf %261, %255 : vector<4x128xf32>
    %263 = arith.mulf %262, %260 : vector<4x128xf32>
    %264 = arith.mulf %255, %233 : vector<4x128xf32>
    %265 = arith.addf %263, %264 : vector<4x128xf32>
    %266 = vector.extract_strided_slice %265 {offsets = [0, 0], sizes = [4, 16], strides = [1, 1]} : vector<4x128xf32> to vector<4x16xf32>
    %cst_41 = arith.constant dense<0.000000e+00> : vector<4x768xf32>
    %267 = tpu.matmul %266, %1, %cst_41 {dimension_numbers = #tpu.dot_dimension_numbers<[1], [0], [0], [1], [0, 0, 1, 1], [], []>} : vector<4x16xf32>, vector<16x768xf32>, vector<4x768xf32> -> vector<4x768xf32>
    %268 = vector.extract_strided_slice %267 {offsets = [0, 0], sizes = [4, 384], strides = [1, 1]} : vector<4x768xf32> to vector<4x384xf32>
    %269 = vector.extract_strided_slice %267 {offsets = [0, 384], sizes = [4, 384], strides = [1, 1]} : vector<4x768xf32> to vector<4x384xf32>
    %270 = arith.select %40, %268, %269 : vector<4x384xi1>, vector<4x384xf32>
    %271 = arith.addf %270, %6 : vector<4x384xf32>
    %272 = vector.extract_strided_slice %37 {offsets = [0, 0], sizes = [4, 128], strides = [1, 1]} : vector<4x384xf32> to vector<4x128xf32>
    %273 = vector.extract_strided_slice %271 {offsets = [0, 0], sizes = [4, 128], strides = [1, 1]} : vector<4x384xf32> to vector<4x128xf32>
    %274 = arith.addf %272, %273 : vector<4x128xf32>
    %275 = arith.negf %274 : vector<4x128xf32>
    %276 = math.exp %275 : vector<4x128xf32>
    %cst_42 = arith.constant 1.000000e+00 : f32
    %277 = vector.broadcast %cst_42 : f32 to vector<4x128xf32>
    %278 = arith.addf %277, %276 : vector<4x128xf32>
    %279 = arith.divf %277, %278 : vector<4x128xf32>
    %280 = vector.extract_strided_slice %37 {offsets = [0, 128], sizes = [4, 128], strides = [1, 1]} : vector<4x384xf32> to vector<4x128xf32>
    %281 = vector.extract_strided_slice %271 {offsets = [0, 128], sizes = [4, 128], strides = [1, 1]} : vector<4x384xf32> to vector<4x128xf32>
    %282 = arith.addf %280, %281 : vector<4x128xf32>
    %283 = arith.negf %282 : vector<4x128xf32>
    %284 = math.exp %283 : vector<4x128xf32>
    %cst_43 = arith.constant 1.000000e+00 : f32
    %285 = vector.broadcast %cst_43 : f32 to vector<4x128xf32>
    %286 = arith.addf %285, %284 : vector<4x128xf32>
    %287 = arith.divf %285, %286 : vector<4x128xf32>
    %288 = vector.extract_strided_slice %37 {offsets = [0, 256], sizes = [4, 128], strides = [1, 1]} : vector<4x384xf32> to vector<4x128xf32>
    %289 = vector.extract_strided_slice %271 {offsets = [0, 256], sizes = [4, 128], strides = [1, 1]} : vector<4x384xf32> to vector<4x128xf32>
    %290 = arith.mulf %279, %289 : vector<4x128xf32>
    %291 = arith.addf %288, %290 : vector<4x128xf32>
    %292 = math.tanh %291 : vector<4x128xf32>
    %cst_44 = arith.constant 1.000000e+00 : f32
    %293 = vector.broadcast %cst_44 : f32 to vector<4x128xf32>
    %294 = arith.subf %293, %287 : vector<4x128xf32>
    %295 = arith.mulf %294, %292 : vector<4x128xf32>
    %296 = arith.mulf %287, %265 : vector<4x128xf32>
    %297 = arith.addf %295, %296 : vector<4x128xf32>
    %298 = vector.extract_strided_slice %73 {offsets = [0, 0], sizes = [2, 128], strides = [1, 1]} : vector<4x128xf32> to vector<2x128xf32>
    %299 = vector.extract_strided_slice %105 {offsets = [0, 0], sizes = [2, 128], strides = [1, 1]} : vector<4x128xf32> to vector<2x128xf32>
    %300 = vector.extract_strided_slice %137 {offsets = [0, 0], sizes = [2, 128], strides = [1, 1]} : vector<4x128xf32> to vector<2x128xf32>
    %301 = vector.extract_strided_slice %169 {offsets = [0, 0], sizes = [2, 128], strides = [1, 1]} : vector<4x128xf32> to vector<2x128xf32>
    %302 = vector.extract_strided_slice %201 {offsets = [0, 0], sizes = [2, 128], strides = [1, 1]} : vector<4x128xf32> to vector<2x128xf32>
    %303 = vector.extract_strided_slice %233 {offsets = [0, 0], sizes = [2, 128], strides = [1, 1]} : vector<4x128xf32> to vector<2x128xf32>
    %304 = vector.extract_strided_slice %265 {offsets = [0, 0], sizes = [2, 128], strides = [1, 1]} : vector<4x128xf32> to vector<2x128xf32>
    %305 = vector.extract_strided_slice %297 {offsets = [0, 0], sizes = [2, 128], strides = [1, 1]} : vector<4x128xf32> to vector<2x128xf32>
    %306 = tpu.concatenate %298, %299, %300, %301, %302, %303, %304, %305 in 0 : vector<2x128xf32>, vector<2x128xf32>, vector<2x128xf32>, vector<2x128xf32>, vector<2x128xf32>, vector<2x128xf32>, vector<2x128xf32>, vector<2x128xf32> -> vector<16x128xf32>
    %307 = vector.extract_strided_slice %297 {offsets = [2, 0], sizes = [2, 128], strides = [1, 1]} : vector<4x128xf32> to vector<2x128xf32>
    %308 = vector.extract_strided_slice %265 {offsets = [2, 0], sizes = [2, 128], strides = [1, 1]} : vector<4x128xf32> to vector<2x128xf32>
    %309 = vector.extract_strided_slice %233 {offsets = [2, 0], sizes = [2, 128], strides = [1, 1]} : vector<4x128xf32> to vector<2x128xf32>
    %310 = vector.extract_strided_slice %201 {offsets = [2, 0], sizes = [2, 128], strides = [1, 1]} : vector<4x128xf32> to vector<2x128xf32>
    %311 = vector.extract_strided_slice %169 {offsets = [2, 0], sizes = [2, 128], strides = [1, 1]} : vector<4x128xf32> to vector<2x128xf32>
    %312 = vector.extract_strided_slice %137 {offsets = [2, 0], sizes = [2, 128], strides = [1, 1]} : vector<4x128xf32> to vector<2x128xf32>
    %313 = vector.extract_strided_slice %105 {offsets = [2, 0], sizes = [2, 128], strides = [1, 1]} : vector<4x128xf32> to vector<2x128xf32>
    %314 = vector.extract_strided_slice %73 {offsets = [2, 0], sizes = [2, 128], strides = [1, 1]} : vector<4x128xf32> to vector<2x128xf32>
    %315 = tpu.concatenate %307, %308, %309, %310, %311, %312, %313, %314 in 0 : vector<2x128xf32>, vector<2x128xf32>, vector<2x128xf32>, vector<2x128xf32>, vector<2x128xf32>, vector<2x128xf32>, vector<2x128xf32>, vector<2x128xf32> -> vector<16x128xf32>
    %316 = vector.extract_strided_slice %306 {offsets = [0, 0], sizes = [16, 16], strides = [1, 1]} : vector<16x128xf32> to vector<16x16xf32>
    %cst_45 = arith.constant dense<0.000000e+00> : vector<16x128xf32>
    %317 = tpu.matmul %316, %2, %cst_45 {dimension_numbers = #tpu.dot_dimension_numbers<[1], [0], [0], [1], [0, 0, 1, 1], [], []>} : vector<16x16xf32>, vector<16x128xf32>, vector<16x128xf32> -> vector<16x128xf32>
    %318 = vector.extract_strided_slice %315 {offsets = [0, 0], sizes = [16, 16], strides = [1, 1]} : vector<16x128xf32> to vector<16x16xf32>
    %cst_46 = arith.constant dense<0.000000e+00> : vector<16x128xf32>
    %319 = tpu.matmul %318, %3, %cst_46 {dimension_numbers = #tpu.dot_dimension_numbers<[1], [0], [0], [1], [0, 0, 1, 1], [], []>} : vector<16x16xf32>, vector<16x128xf32>, vector<16x128xf32> -> vector<16x128xf32>
    %320 = arith.addf %317, %319 : vector<16x128xf32>
    %321 = vector.broadcast %5 : vector<1x128xf32> to vector<16x128xf32>
    %322 = arith.addf %320, %321 : vector<16x128xf32>
    %c0_47 = arith.constant 0 : index
    %c0_48 = arith.constant 0 : index
    %323 = vector.load %arg3[%c0_47, %c0_48] : memref<16x128xf32, #tpu.memory_space<vmem>>, vector<16x128xf32>
    tpu.vector_store %arg3[%c0_47, %c0_48], %322 {strides = array<i32>} : memref<16x128xf32, #tpu.memory_space<vmem>>, vector<16x128xf32>,
    %324 = vector.extract_strided_slice %322 {offsets = [0, 0], sizes = [16, 5], strides = [1, 1]} : vector<16x128xf32> to vector<16x5xf32>
    %c0_49 = arith.constant 0 : index
    %c0_50 = arith.constant 0 : index
    %325 = vector.load %arg1[%c0_49, %c0_50] : memref<16x5xf32, #tpu.memory_space<vmem>>, vector<16x5xf32>
    %326 = arith.mulf %324, %325 : vector<16x5xf32>
    %327 = vector.shape_cast %326 : vector<16x5xf32> to vector<1x16x5xf32>
    %cst_51 = arith.constant dense<0.000000e+00> : vector<1xf32>
    %328 = vector.multi_reduction <add>, %327, %cst_51 [1, 2] : vector<1x16x5xf32> to vector<1xf32>
    %329 = vector.shape_cast %328 : vector<1xf32> to vector<1x1x1xf32>
    %330 = vector.extract %329[0, 0, 0] : f32 from vector<1x1x1xf32>
    %331 = vector.extract_strided_slice %325 {offsets = [0, 0], sizes = [2, 5], strides = [1, 1]} : vector<16x5xf32> to vector<2x5xf32>
    %332 = vector.broadcast %7 : vector<1x5xf32> to vector<2x5xf32>
    %333 = arith.mulf %332, %331 : vector<2x5xf32>
    %334 = vector.shape_cast %333 : vector<2x5xf32> to vector<1x2x5xf32>
    %cst_52 = arith.constant dense<0.000000e+00> : vector<1xf32>
    %335 = vector.multi_reduction <add>, %334, %cst_52 [1, 2] : vector<1x2x5xf32> to vector<1xf32>
    %336 = vector.shape_cast %335 : vector<1xf32> to vector<1x1x1xf32>
    %337 = vector.extract %336[0, 0, 0] : f32 from vector<1x1x1xf32>
    %338 = vector.extract_strided_slice %325 {offsets = [14, 0], sizes = [2, 5], strides = [1, 1]} : vector<16x5xf32> to vector<2x5xf32>
    %339 = vector.broadcast %8 : vector<1x5xf32> to vector<2x5xf32>
    %340 = arith.mulf %339, %338 : vector<2x5xf32>
    %341 = vector.shape_cast %340 : vector<2x5xf32> to vector<1x2x5xf32>
    %cst_53 = arith.constant dense<0.000000e+00> : vector<1xf32>
    %342 = vector.multi_reduction <add>, %341, %cst_53 [1, 2] : vector<1x2x5xf32> to vector<1xf32>
    %343 = vector.shape_cast %342 : vector<1xf32> to vector<1x1x1xf32>
    %344 = vector.extract %343[0, 0, 0] : f32 from vector<1x1x1xf32>
    %345 = vector.extract_strided_slice %325 {offsets = [0, 0], sizes = [14, 5], strides = [1, 1]} : vector<16x5xf32> to vector<14x5xf32>
    %cst_54 = arith.constant dense<0.000000e+00> : vector<14x5xf32>
    %346 = tpu.matmul %345, %9, %cst_54 {dimension_numbers = #tpu.dot_dimension_numbers<[1], [0], [0], [1], [0, 0, 1, 1], [], []>} : vector<14x5xf32>, vector<5x5xf32>, vector<14x5xf32> -> vector<14x5xf32>
    %347 = vector.extract_strided_slice %325 {offsets = [2, 0], sizes = [14, 5], strides = [1, 1]} : vector<16x5xf32> to vector<14x5xf32>
    %348 = arith.mulf %346, %347 : vector<14x5xf32>
    %349 = vector.shape_cast %348 : vector<14x5xf32> to vector<1x14x5xf32>
    %cst_55 = arith.constant dense<0.000000e+00> : vector<1xf32>
    %350 = vector.multi_reduction <add>, %349, %cst_55 [1, 2] : vector<1x14x5xf32> to vector<1xf32>
    %351 = vector.shape_cast %350 : vector<1xf32> to vector<1x1x1xf32>
    %352 = vector.extract %351[0, 0, 0] : f32 from vector<1x1x1xf32>
    %353 = arith.addf %330, %337 : f32
    %354 = arith.addf %353, %344 : f32
    %355 = arith.addf %354, %352 : f32
    %356 = vector.shape_cast %9 : vector<5x5xf32> to vector<1x5x5xf32>
    %357 = vector.shape_cast %356 : vector<1x5x5xf32> to vector<1x5x5xf32>
    %358 = vector.broadcast %357 : vector<1x5x5xf32> to vector<2x5x5xf32>
    %359 = vector.extract_strided_slice %324 {offsets = [0, 0], sizes = [2, 5], strides = [1, 1]} : vector<16x5xf32> to vector<2x5xf32>
    %360 = vector.extract_strided_slice %324 {offsets = [2, 0], sizes = [2, 5], strides = [1, 1]} : vector<16x5xf32> to vector<2x5xf32>
    %361 = vector.extract_strided_slice %324 {offsets = [4, 0], sizes = [2, 5], strides = [1, 1]} : vector<16x5xf32> to vector<2x5xf32>
    %362 = vector.extract_strided_slice %324 {offsets = [6, 0], sizes = [2, 5], strides = [1, 1]} : vector<16x5xf32> to vector<2x5xf32>
    %363 = vector.extract_strided_slice %324 {offsets = [8, 0], sizes = [2, 5], strides = [1, 1]} : vector<16x5xf32> to vector<2x5xf32>
    %364 = vector.extract_strided_slice %324 {offsets = [10, 0], sizes = [2, 5], strides = [1, 1]} : vector<16x5xf32> to vector<2x5xf32>
    %365 = vector.extract_strided_slice %324 {offsets = [12, 0], sizes = [2, 5], strides = [1, 1]} : vector<16x5xf32> to vector<2x5xf32>
    %366 = vector.extract_strided_slice %324 {offsets = [14, 0], sizes = [2, 5], strides = [1, 1]} : vector<16x5xf32> to vector<2x5xf32>
    %367 = vector.broadcast %7 : vector<1x5xf32> to vector<2x5xf32>
    %368 = arith.addf %367, %359 : vector<2x5xf32>
    %369 = vector.shape_cast %368 : vector<2x5xf32> to vector<2x5x1xf32>
    %370 = vector.broadcast %369 : vector<2x5x1xf32> to vector<2x5x5xf32>
    %371 = arith.addf %370, %358 : vector<2x5x5xf32>
    %cst_56 = arith.constant dense<0xFF800000> : vector<2x5xf32>
    %372 = vector.multi_reduction <maximumf>, %371, %cst_56 [1] : vector<2x5x5xf32> to vector<2x5xf32>
    %373 = vector.shape_cast %372 : vector<2x5xf32> to vector<2x1x5xf32>
    %374 = vector.shape_cast %373 : vector<2x1x5xf32> to vector<2x5xf32>
    %375 = vector.broadcast %373 : vector<2x1x5xf32> to vector<2x5x5xf32>
    %376 = arith.subf %371, %375 : vector<2x5x5xf32>
    %377 = math.exp %376 : vector<2x5x5xf32>
    %cst_57 = arith.constant dense<0.000000e+00> : vector<2x5xf32>
    %378 = vector.multi_reduction <add>, %377, %cst_57 [1] : vector<2x5x5xf32> to vector<2x5xf32>
    %379 = math.log %378 : vector<2x5xf32>
    %380 = arith.addf %374, %379 : vector<2x5xf32>
    %381 = arith.addf %380, %360 : vector<2x5xf32>
    %382 = vector.shape_cast %381 : vector<2x5xf32> to vector<2x5x1xf32>
    %383 = vector.broadcast %382 : vector<2x5x1xf32> to vector<2x5x5xf32>
    %384 = arith.addf %383, %358 : vector<2x5x5xf32>
    %cst_58 = arith.constant dense<0xFF800000> : vector<2x5xf32>
    %385 = vector.multi_reduction <maximumf>, %384, %cst_58 [1] : vector<2x5x5xf32> to vector<2x5xf32>
    %386 = vector.shape_cast %385 : vector<2x5xf32> to vector<2x1x5xf32>
    %387 = vector.shape_cast %386 : vector<2x1x5xf32> to vector<2x5xf32>
    %388 = vector.broadcast %386 : vector<2x1x5xf32> to vector<2x5x5xf32>
    %389 = arith.subf %384, %388 : vector<2x5x5xf32>
    %390 = math.exp %389 : vector<2x5x5xf32>
    %cst_59 = arith.constant dense<0.000000e+00> : vector<2x5xf32>
    %391 = vector.multi_reduction <add>, %390, %cst_59 [1] : vector<2x5x5xf32> to vector<2x5xf32>
    %392 = math.log %391 : vector<2x5xf32>
    %393 = arith.addf %387, %392 : vector<2x5xf32>
    %394 = arith.addf %393, %361 : vector<2x5xf32>
    %395 = vector.shape_cast %394 : vector<2x5xf32> to vector<2x5x1xf32>
    %396 = vector.broadcast %395 : vector<2x5x1xf32> to vector<2x5x5xf32>
    %397 = arith.addf %396, %358 : vector<2x5x5xf32>
    %cst_60 = arith.constant dense<0xFF800000> : vector<2x5xf32>
    %398 = vector.multi_reduction <maximumf>, %397, %cst_60 [1] : vector<2x5x5xf32> to vector<2x5xf32>
    %399 = vector.shape_cast %398 : vector<2x5xf32> to vector<2x1x5xf32>
    %400 = vector.shape_cast %399 : vector<2x1x5xf32> to vector<2x5xf32>
    %401 = vector.broadcast %399 : vector<2x1x5xf32> to vector<2x5x5xf32>
    %402 = arith.subf %397, %401 : vector<2x5x5xf32>
    %403 = math.exp %402 : vector<2x5x5xf32>
    %cst_61 = arith.constant dense<0.000000e+00> : vector<2x5xf32>
    %404 = vector.multi_reduction <add>, %403, %cst_61 [1] : vector<2x5x5xf32> to vector<2x5xf32>
    %405 = math.log %404 : vector<2x5xf32>
    %406 = arith.addf %400, %405 : vector<2x5xf32>
    %407 = arith.addf %406, %362 : vector<2x5xf32>
    %408 = vector.shape_cast %407 : vector<2x5xf32> to vector<2x5x1xf32>
    %409 = vector.broadcast %408 : vector<2x5x1xf32> to vector<2x5x5xf32>
    %410 = arith.addf %409, %358 : vector<2x5x5xf32>
    %cst_62 = arith.constant dense<0xFF800000> : vector<2x5xf32>
    %411 = vector.multi_reduction <maximumf>, %410, %cst_62 [1] : vector<2x5x5xf32> to vector<2x5xf32>
    %412 = vector.shape_cast %411 : vector<2x5xf32> to vector<2x1x5xf32>
    %413 = vector.shape_cast %412 : vector<2x1x5xf32> to vector<2x5xf32>
    %414 = vector.broadcast %412 : vector<2x1x5xf32> to vector<2x5x5xf32>
    %415 = arith.subf %410, %414 : vector<2x5x5xf32>
    %416 = math.exp %415 : vector<2x5x5xf32>
    %cst_63 = arith.constant dense<0.000000e+00> : vector<2x5xf32>
    %417 = vector.multi_reduction <add>, %416, %cst_63 [1] : vector<2x5x5xf32> to vector<2x5xf32>
    %418 = math.log %417 : vector<2x5xf32>
    %419 = arith.addf %413, %418 : vector<2x5xf32>
    %420 = arith.addf %419, %363 : vector<2x5xf32>
    %421 = vector.shape_cast %420 : vector<2x5xf32> to vector<2x5x1xf32>
    %422 = vector.broadcast %421 : vector<2x5x1xf32> to vector<2x5x5xf32>
    %423 = arith.addf %422, %358 : vector<2x5x5xf32>
    %cst_64 = arith.constant dense<0xFF800000> : vector<2x5xf32>
    %424 = vector.multi_reduction <maximumf>, %423, %cst_64 [1] : vector<2x5x5xf32> to vector<2x5xf32>
    %425 = vector.shape_cast %424 : vector<2x5xf32> to vector<2x1x5xf32>
    %426 = vector.shape_cast %425 : vector<2x1x5xf32> to vector<2x5xf32>
    %427 = vector.broadcast %425 : vector<2x1x5xf32> to vector<2x5x5xf32>
    %428 = arith.subf %423, %427 : vector<2x5x5xf32>
    %429 = math.exp %428 : vector<2x5x5xf32>
    %cst_65 = arith.constant dense<0.000000e+00> : vector<2x5xf32>
    %430 = vector.multi_reduction <add>, %429, %cst_65 [1] : vector<2x5x5xf32> to vector<2x5xf32>
    %431 = math.log %430 : vector<2x5xf32>
    %432 = arith.addf %426, %431 : vector<2x5xf32>
    %433 = arith.addf %432, %364 : vector<2x5xf32>
    %434 = vector.shape_cast %433 : vector<2x5xf32> to vector<2x5x1xf32>
    %435 = vector.broadcast %434 : vector<2x5x1xf32> to vector<2x5x5xf32>
    %436 = arith.addf %435, %358 : vector<2x5x5xf32>
    %cst_66 = arith.constant dense<0xFF800000> : vector<2x5xf32>
    %437 = vector.multi_reduction <maximumf>, %436, %cst_66 [1] : vector<2x5x5xf32> to vector<2x5xf32>
    %438 = vector.shape_cast %437 : vector<2x5xf32> to vector<2x1x5xf32>
    %439 = vector.shape_cast %438 : vector<2x1x5xf32> to vector<2x5xf32>
    %440 = vector.broadcast %438 : vector<2x1x5xf32> to vector<2x5x5xf32>
    %441 = arith.subf %436, %440 : vector<2x5x5xf32>
    %442 = math.exp %441 : vector<2x5x5xf32>
    %cst_67 = arith.constant dense<0.000000e+00> : vector<2x5xf32>
    %443 = vector.multi_reduction <add>, %442, %cst_67 [1] : vector<2x5x5xf32> to vector<2x5xf32>
    %444 = math.log %443 : vector<2x5xf32>
    %445 = arith.addf %439, %444 : vector<2x5xf32>
    %446 = arith.addf %445, %365 : vector<2x5xf32>
    %447 = vector.shape_cast %446 : vector<2x5xf32> to vector<2x5x1xf32>
    %448 = vector.broadcast %447 : vector<2x5x1xf32> to vector<2x5x5xf32>
    %449 = arith.addf %448, %358 : vector<2x5x5xf32>
    %cst_68 = arith.constant dense<0xFF800000> : vector<2x5xf32>
    %450 = vector.multi_reduction <maximumf>, %449, %cst_68 [1] : vector<2x5x5xf32> to vector<2x5xf32>
    %451 = vector.shape_cast %450 : vector<2x5xf32> to vector<2x1x5xf32>
    %452 = vector.shape_cast %451 : vector<2x1x5xf32> to vector<2x5xf32>
    %453 = vector.broadcast %451 : vector<2x1x5xf32> to vector<2x5x5xf32>
    %454 = arith.subf %449, %453 : vector<2x5x5xf32>
    %455 = math.exp %454 : vector<2x5x5xf32>
    %cst_69 = arith.constant dense<0.000000e+00> : vector<2x5xf32>
    %456 = vector.multi_reduction <add>, %455, %cst_69 [1] : vector<2x5x5xf32> to vector<2x5xf32>
    %457 = math.log %456 : vector<2x5xf32>
    %458 = arith.addf %452, %457 : vector<2x5xf32>
    %459 = arith.addf %458, %366 : vector<2x5xf32>
    %460 = vector.broadcast %8 : vector<1x5xf32> to vector<2x5xf32>
    %461 = arith.addf %459, %460 : vector<2x5xf32>
    %cst_70 = arith.constant dense<0xFF800000> : vector<2xf32>
    %462 = vector.multi_reduction <maximumf>, %461, %cst_70 [1] : vector<2x5xf32> to vector<2xf32>
    %463 = vector.shape_cast %462 : vector<2xf32> to vector<2x1xf32>
    %464 = vector.broadcast %463 : vector<2x1xf32> to vector<2x5xf32>
    %465 = arith.subf %461, %464 : vector<2x5xf32>
    %466 = math.exp %465 : vector<2x5xf32>
    %cst_71 = arith.constant dense<0.000000e+00> : vector<2xf32>
    %467 = vector.multi_reduction <add>, %466, %cst_71 [1] : vector<2x5xf32> to vector<2xf32>
    %468 = vector.shape_cast %467 : vector<2xf32> to vector<2x1xf32>
    %469 = math.log %468 : vector<2x1xf32>
    %470 = arith.addf %463, %469 : vector<2x1xf32>
    %471 = vector.shape_cast %470 : vector<2x1xf32> to vector<1x2x1xf32>
    %cst_72 = arith.constant dense<0.000000e+00> : vector<1xf32>
    %472 = vector.multi_reduction <add>, %471, %cst_72 [1, 2] : vector<1x2x1xf32> to vector<1xf32>
    %473 = vector.shape_cast %472 : vector<1xf32> to vector<1x1x1xf32>
    %474 = vector.extract %473[0, 0, 0] : f32 from vector<1x1x1xf32>
    %475 = arith.subf %474, %355 : f32
    %c0_73 = arith.constant 0 : index
    %c0_74 = arith.constant 0 : index
    %476 = memref.load %arg4[%c0_73, %c0_74] : memref<1x1xf32, #tpu.memory_space<smem>>
    memref.store %475, %arg4[%c0_73, %c0_74] : memref<1x1xf32, #tpu.memory_space<smem>>
    return
  }
}

</mosaic_0001>

<bundles_post_ra>
// kernel: custom-call.4
= control target key start
LH: loop header
LB: loop body
LE: loop exit
PB: predicated region body
PF: predicated region fallthrough
CT: control target
= control target key end

     0   :  { %s6_s0 = inlined_call_operand.vmem [shape: s32[7,2,5], index: 0, kind: output, shape index: {}]  }

// kernel: model_forward.1
= control target key start
LH: loop header
LB: loop body
LE: loop exit
PB: predicated region body
PF: predicated region fallthrough
CT: control target
= control target key end

     0   :  { %10 = vsyncpa [#allocation3], 0  ;;  %s4245_s0 = inlined_call_operand.vmem [shape: f32[16,16], index: 0, kind: input, shape index: {}]   ;;  %s4246_s1 = inlined_call_operand.vmem [shape: f32[16,5], index: 1, kind: input, shape index: {}]   ;;  %s4247_s2 = inlined_call_operand.hbm [shape: f32[64,768], index: 2, kind: input, shape index: {}]   ;;  %s4248_s3 = inlined_call_operand.vmem [shape: f32[16,128], index: 3, kind: output, shape index: {0}]   ;;  %s4249_s4 = inlined_call_operand.hbm [shape: f32[1,1], index: 4, kind: output, shape index: {1}]  }
   0x1   :  { %11 = vsyncpa [#allocation4], 0  ;;  %s3646_s15 = smov [#allocation2]   ;;  %s3610_s19 = scalar_lea.hbm %s4247_s2, 6144 }
   0x2   :  { %s21_s16 = sshll.u32 %s3646_s15, 4  ;;  %p3611_p0 = scmp.ne.s32.totalorder %s4247_s2, %s3610_s19  ;;  %s22_s16 = int_to_ptr.vmem [resolvable:$true] %s21_s16 }
   0x3   :  { %p3614_p1 = scmp.lt.u32.totalorder %s3610_s19, %s4247_s2 }
   0x5   :  { %p3616_p2 = pnand %p3614_p1, %p3611_p0 }
   0x7   :  { %3619 = shalt.err (!%p3616_p2)
}
   0x8   :  { %s3620_s24 = scalar_lea.vmem %s22_s16, 6144  ;;  %p3625_p4 = scmp.lt.s32.totalorder %s22_s16, %s22_s16 }
   0x9   :  { %p3621_p3 = scmp.ne.s32.totalorder %s22_s16, %s3620_s24  ;;  %p3626_p5 = scmp.lt.s32.totalorder %s3620_s24, %s3620_s24 }
   0xb   :  { %p3627_p6 = por %p3626_p5, %p3625_p4 }
   0xd   :  { %p3628_p7 = pnand %p3627_p6, %p3621_p3 }
   0xf   :  { %3631 = shalt.err (!%p3628_p7)
}
  0x10   :  { %s3647_s25 = smov 768   ;;  %s3648_s26 = smov 48  }
  0x11   :  { %27 = dma.hbm_to_vmem [thread:$0]  %s4247_s2, 6144, %s22_s16, [#allocation3], %s3647_s25, %s3647_s25, %s3648_s26  }
  0x12   :  { %3642 = dma.done.wait [#allocation3], 6144  }
  0x13   :  { %3643 = vsyncadd [#allocation3], 4294961152  ;;  %v3649_v0 = vmov 0.0   ;;  %v32_v1 = vld [vmem:[#allocation2 + $0x8] sm:$0xff]  ;;  %v38_v2 = vld [vmem:[#allocation2 + $0x38] sm:$0xff]  ;;  %vm103_vm0 = vcmask 130048   ;;  %v73_v39 = vlaneseq }
  0x14   :  { %174 = vmatprep.mubr.f32.mxu0 %v3649_v0  ;;  %251 = vmatprep.mubr.f32.mxu1 %v3649_v0  ;;  %v34_v3 = vld [vmem:[#allocation2 + $0x18] sm:$0xff]  ;;  %v3335_v4 = vpack.c.bf16 %v38_v2, %v32_v1  ;;  %v40_v5 = vld [vmem:[#allocation2 + $0x48] sm:$0xff]  ;;  %v31_v6 = vld [vmem:[#allocation2] sm:$0xff]  ;;  %vm350_vm1 = vcmask 1041408   ;;  %vm2420_vm3 = vcmask 1043456   ;;  %vm2422_vm4 = vcmask 1045504  }
  0x15   :  { %v37_v7 = vld [vmem:[#allocation2 + $0x30] sm:$0xff]  ;;  %v3339_v8 = vpack.c.bf16 %v40_v5, %v34_v3  ;;  %v39_v11 = vld [vmem:[#allocation2 + $0x40] sm:$0xff]  ;;  %v44_v13 = vld [vmem:[#allocation2 + $0x68] sm:$0xff]  ;;  %v3738_v40 = vshrl.u32 %v73_v39, 7  ;;  %vm2607_vm5 = vcmask 39936   ;;  %vm2771_vm6 = vcmask 36864  }
  0x16   :  { %v3337_v9 = vpack.c.bf16 %v37_v7, %v31_v6  ;;  %v33_v10 = vld [vmem:[#allocation2 + $0x10] sm:$0xff]  ;;  %3336 = vmatprep.subr.bf16.mxu0 %v3335_v4  ;;  %v50_v14 = vld [vmem:[#allocation2 + $0x98] sm:$0xff]  ;;  %v43_v15 = vld [vmem:[#allocation2 + $0x60] sm:$0xff]  ;;  %vm2652_vm7 = vcmask 1044480   ;;  %vm3196_vm8 = vcmask 1041409   ;;  %vm2621_vm9 = vcmask 33792  }
  0x17   :  { %v3341_v12 = vpack.c.bf16 %v39_v11, %v33_v10  ;;  %3340 = vmatprep.subr.bf16.mxu1 %v3339_v8  ;;  %v70_v16 = vld [vmem:[%s4245_s0] sm:$0xff]  ;;  %v3693_v17 = vpack.c.bf16 %v50_v14, %v44_v13  ;;  %v49_v18 = vld [vmem:[#allocation2 + $0x90] sm:$0xff]  ;;  %v36_v19 = vld [vmem:[#allocation2 + $0x28] sm:$0xff]  ;;  %v3741_v43 = vsub.s32 0, %v3738_v40  ;;  %v83_v45 = vsub.s32 2, %v3738_v40  ;;  %s3632_s22 = scalar_lea.hbm %s4249_s4, 16 }
  0x18   :  { %3338 = vmatpush1.bf16.msra.mxu0 %v3337_v9  ;;  %v3695_v20 = vpack.c.bf16 %v49_v18, %v43_v15  ;;  %v42_v21 = vld [vmem:[#allocation2 + $0x58] sm:$0xff]  ;;  %v35_v22 = vld [vmem:[#allocation2 + $0x20] sm:$0xff]  ;;  %v41_v23 = vld [vmem:[#allocation2 + $0x50] sm:$0xff]  ;;  %v79_v46 = vsub.s32 1, %v3738_v40  ;;  %v87_v47 = vsub.s32 3, %v3738_v40  ;;  %v91_v52 = vsub.s32 4, %v3738_v40  ;;  %p3633_p8 = scmp.ne.s32.totalorder %s4249_s4, %s3632_s22  ;;  %p3636_p9 = scmp.lt.u32.totalorder %s3632_s22, %s4249_s4 }
  0x19   :  { %3342 = vmatpush1.bf16.msra.mxu1 %v3341_v12  ;;  %v3343_v24 = vpack.c.bf16 %v42_v21, %v36_v19  ;;  %v46_v25 = vld [vmem:[#allocation2 + $0x78] sm:$0xff]  ;;  %v52_v26 = vld [vmem:[#allocation2 + $0xa8] sm:$0xff]  ;;  %v3345_v31 = vpack.c.bf16 %v41_v23, %v35_v22  ;;  %v45_v32 = vld [vmem:[#allocation2 + $0x70] sm:$0xff]  ;;  %v95_v53 = vsub.s32 5, %v3738_v40  ;;  %vm452_vm2 = vcmp.lt.s32.totalorder %v3738_v40, 2 }
  0x1a   :  { %3348 = vmatprep.subr.bf16.mxu1 %v3693_v17  ;;  %v3699_v27 = vpack.c.bf16 %v52_v26, %v46_v25  ;;  %v48_v28 = vld [vmem:[#allocation2 + $0x88] sm:$0xff]  ;;  %v54_v29 = vld [vmem:[#allocation2 + $0xb8] sm:$0xff]  ;;  %v51_v33 = vld [vmem:[#allocation2 + $0xa0] sm:$0xff]  ;;  %vm2739_vm10 = vcmask 37888   ;;  %vm3223_vm11 = vcmask 1024   ;;  %p3638_p10 = pnand %p3636_p9, %p3633_p8 }
  0x1b   :  { %3255 = vmatmul.mubr.msk.f32.vlgmr.msra.gmra.mrb[0].mxu0 %vm103_vm0, %v70_v16  ;;  %v71_v30 = vld [vmem:[%s4245_s0 + $0x8] sm:$0xff]  ;;  %3344 = vmatprep.subr.bf16.mxu0 %v3343_v24  ;;  %v3709_v34 = vpack.c.bf16 %v54_v29, %v48_v28  ;;  %v47_v35 = vld [vmem:[#allocation2 + $0x80] sm:$0xff]  ;;  %v53_v36 = vld [vmem:[#allocation2 + $0xb0] sm:$0xff]  ;;  %v3715_v37 = vpack.c.bf16 %v51_v33, %v45_v32 }
  0x1c   :  { %3257 = vmatmul.mubr.msk.f32.vlgmr.msra.gmra.mrb[0].mxu1 %vm103_vm0, %v70_v16  ;;  %180 = vmatprep.mubr.f32.mxu0 %v3649_v0  ;;  %v3718_v38 = vpack.c.bf16 %v53_v36, %v47_v35  ;;  %v60_v41 = vld [vmem:[#allocation2 + $0x120] ss:$8 sm:$0xf]  ;;  %v64_v55 = vld [vmem:[#allocation2 + $0x120] sm:$0x3c] }
  0x1d   :  { %3350 = vmatpush1.bf16.msra.mxu1 %v3695_v20  ;;  %257 = vmatprep.mubr.f32.mxu1 %v3649_v0  ;;  %v61_v42 = vld [vmem:[#allocation2 + $0x120] ss:$8 sm:$0x30]  ;;  %v65_v59 = vld [vmem:[#allocation2 + $0x128] sm:$0x3c]  ;;  %v3757_v3 = vrot.slane %v64_v55, 2 }
  0x1e   :  { %3352 = vmatprep.subr.bf16.mxu1 %v3699_v27  ;;  %3346 = vmatpush1.bf16.msra.mxu0 %v3345_v31  ;;  %v62_v44 = vor.u32 %v61_v42, %v60_v41  ;;  %v3760_v8 = vrot.slane %v65_v59, 2 }
  0x1f   :  { %3256 = vmatmul.mubr.msk.f32.gmra.mrb[2].mxu0 %vm103_vm0, %v71_v30  ;;  %3356 = vmatprep.subr.bf16.mxu0 %v3709_v34 }
  0x20   :  { %3258 = vmatmul.mubr.msk.f32.gmra.mrb[2].mxu1 %vm103_vm0, %v71_v30  ;;  %328 = vmatprep.mubr.f32.mxu0 %v3649_v0  ;;  %v76_v48 = vrot.slane %v62_v44, %v3741_v43  ;;  %v84_v49 = vrot.slane %v62_v44, %v83_v45  ;;  %v80_v50 = vrot.slane %v62_v44, %v79_v46 }
  0x21   :  { %520 = vmatprep.mubr.f32.mxu1 %v3649_v0  ;;  %v88_v51 = vrot.slane %v62_v44, %v87_v47  ;;  %v92_v1 = vrot.slane %v62_v44, %v91_v52  ;;  %v96_v2 = vrot.slane %v62_v44, %v95_v53 }
  0x23   :  { %3259 = vmatmul.mubr.msk.f32.vlgmr.msra.gmra.mrb[4].mxu0 %vm103_vm0, %v70_v16 }
  0x24   :  { %521 = vmatmul.mubr.f32.vlgmr.msra.gmra.mrb[4].mxu1 %v3649_v0  ;;  %334 = vmatprep.mubr.f32.mxu0 %v3649_v0 }
  0x25   :  { %3354 = vmatpush1.bf16.msra.mxu1 %v3715_v37  ;;  %591 = vmatprep.mubr.f32.mxu1 %v3649_v0 }
  0x26   :  { %3358 = vmatpush1.bf16.msra.mxu0 %v3718_v38  ;;  %3360 = vmatprep.subr.bf16.mxu1 %v3693_v17 }
  0x27   :  { %3260 = vmatmul.mubr.msk.f32.gmra.mrb[6].mxu0 %vm103_vm0, %v71_v30  ;;  %3364 = vmatprep.subr.bf16.mxu0 %v3699_v27 }
  0x28   :  { %592 = vmatmul.mubr.f32.vlgmr.msra.gmra.mrb[6].mxu1 %v3649_v0  ;;  %662 = vmatprep.mubr.f32.mxu0 %v3649_v0 }
  0x29   :  { %3362 = vmatpush1.bf16.msra.mxu1 %v3695_v20  ;;  %772 = vmatprep.mubr.f32.mxu1 %v3649_v0 }
  0x2a   :  { %3368 = vmatprep.subr.bf16.mxu1 %v3709_v34 }
  0x2b   :  { %663 = vmatmul.mubr.f32.vlgmr.msra.gmra.mrb[8].mxu0 %v3649_v0 }
  0x2c   :  { %3366 = vmatpush1.bf16.msra.mxu0 %v3715_v37  ;;  %843 = vmatprep.mubr.f32.mxu0 %v3649_v0 }
  0x2d   :  { %3372 = vmatprep.subr.bf16.mxu0 %v3693_v17 }
  0xee   :  { %v176_v54 = vpop.f32.mrb[0].mxu0 }
  0xef   :  { %v253_v56 = vpop.f32.mrb[0].mxu1  ;;  %v177_v57 = vadd.f32 %v176_v54, %v76_v48  ;;  %v178_v58 = vpop.f32.mrb[1].mxu0 }
  0xf0   :  { %v3751_v60 = vadd.f32 %v253_v56, %v84_v49  ;;  %v255_v61 = vpop.f32.mrb[1].mxu1  ;;  %v3753_v62 = vadd.f32 %v178_v58, %v80_v50 }
  0xf1   :  { %v3755_v63 = vadd.f32 %v255_v61, %v88_v51  ;;  %v357_v4 = vrot.slane %v177_v57, 2  ;;  %v372_v5 = vrot.slane %v177_v57, 4  ;;  %v381_v6 = vrot.slane %v177_v57, 6 }
  0xf2   :  { %v182_v7 = vpop.f32.mrb[2].mxu0  ;;  %v359_v9 = vrot.slane %v3751_v60, 2  ;;  %v374_v10 = vrot.slane %v3751_v60, 4  ;;  %v383_v11 = vrot.slane %v3751_v60, 6  ;;  %v358_v12 = vrot.slane %v3753_v62, 2 }
  0xf3   :  { %v259_v13 = vpop.f32.mrb[2].mxu1  ;;  %v184_v14 = vpop.f32.mrb[3].mxu0  ;;  %v399_v15 = vrot.slane %v3755_v63, 4  ;;  %v3767_v16 = vadd.f32 %v182_v7, %v76_v48  ;;  %v417_v22 = vrot.slane %v3755_v63, 2  ;;  %v441_v23 = vrot.slane %v3755_v63, 6 }
  0xf4   :  { %v3769_v18 = vadd.f32 %v259_v13, %v84_v49  ;;  %v261_v19 = vpop.f32.mrb[3].mxu1  ;;  %v3771_v21 = vadd.f32 %v184_v14, %v80_v50  ;;  %v373_v24 = vrot.slane %v3753_v62, 4  ;;  %v382_v26 = vrot.slane %v3753_v62, 6 }
  0xf5   :  { %v262_v25 = vadd.f32 %v261_v19, %v88_v51  ;;  %v411_v28 = vrot.slane %v3767_v16, 2  ;;  %v426_v29 = vrot.slane %v3767_v16, 4  ;;  %v435_v30 = vrot.slane %v3767_v16, 6 }
  0xf6   :  { %v330_v31 = vpop.f32.mrb[4].mxu0  ;;  %v413_v32 = vrot.slane %v3769_v18, 2  ;;  %v428_v33 = vrot.slane %v3769_v18, 4  ;;  %v437_v42 = vrot.slane %v3769_v18, 6  ;;  %v412_v45 = vrot.slane %v3771_v21, 2 }
  0xf7   :  { %v344_v35 = vrot.slane %v262_v25, 4  ;;  %v363_v36 = vrot.slane %v262_v25, 2  ;;  %v522_v39 = vpop.f32.mrb[4].mxu1  ;;  %v332_v41 = vpop.f32.mrb[5].mxu0  ;;  %v387_v44 = vrot.slane %v262_v25, 6  ;;  %v427_v47 = vrot.slane %v3771_v21, 4 }
  0xf8   :  { %v524_v48 = vpop.f32.mrb[5].mxu1  ;;  %v331_v49 = vadd.f32 %v330_v31, %v92_v1  ;;  %v333_v50 = vadd.f32 %v332_v41, %v96_v2  ;;  %v3790_v54 = vsel %vm350_vm1, %v372_v5, %v262_v25  ;;  %v3797_v56 = vsel %vm350_vm1, %v3767_v16, %v399_v15 }
  0xf9   :  { %v351_v51 = vsel %vm350_vm1, %v177_v57, %v344_v35  ;;  %v3787_v52 = vsel %vm350_vm1, %v357_v4, %v363_v36  ;;  %v3793_v55 = vsel %vm350_vm1, %v381_v6, %v387_v44  ;;  %v3800_v58 = vsel %vm350_vm1, %v411_v28, %v417_v22 }
  0xfa   :  { %v336_v53 = vpop.f32.mrb[6].mxu0  ;;  %v436_v59 = vrot.slane %v3771_v21, 6  ;;  %v400_v57 = vrot.slane %v331_v49, 4  ;;  %v418_v61 = vrot.slane %v331_v49, 2  ;;  %v401_v4 = vrot.slane %v333_v50, 4 }
  0xfb   :  { %v593_v7 = vpop.f32.mrb[6].mxu1  ;;  %v338_v13 = vpop.f32.mrb[7].mxu0  ;;  %v442_v14 = vrot.slane %v331_v49, 6  ;;  %v419_v5 = vrot.slane %v333_v50, 2  ;;  %v337_v19 = vadd.f32 %v336_v53, %v92_v1 }
  0xfc   :  { %v339_v25 = vadd.f32 %v338_v13, %v96_v2  ;;  %v595_v6 = vpop.f32.mrb[7].mxu1  ;;  %v3807_v15 = vsel %vm350_vm1, %v3771_v21, %v400_v57  ;;  %v3811_v22 = vsel %vm350_vm1, %v3769_v18, %v401_v4  ;;  %v3814_v28 = vsel %vm350_vm1, %v412_v45, %v418_v61 }
  0xfd   :  { %v669_v31 = vsel %vm452_vm2, %v522_v39, %v595_v6  ;;  %v345_v35 = vrot.slane %v337_v19, 4  ;;  %v364_v36 = vrot.slane %v337_v19, 2  ;;  %v388_v41 = vrot.slane %v337_v19, 6 }
  0xfe   :  { %v346_v1 = vrot.slane %v339_v25, 4  ;;  %v664_v2 = vpop.f32.mrb[8].mxu0  ;;  %v365_v44 = vrot.slane %v339_v25, 2  ;;  %v389_v53 = vrot.slane %v339_v25, 6  ;;  %v681_v39 = vadd.f32 %v3757_v3, %v669_v31 }
  0xff   :  { %v670_v21 = vsel %vm452_vm2, %v524_v48, %v664_v2  ;;  %v666_v57 = vpop.f32.mrb[9].mxu0  ;;  %v352_v18 = vsel %vm350_vm1, %v3753_v62, %v345_v35  ;;  %v443_v13 = vrot.slane %v333_v50, 6  ;;  %v370_v31 = vsel %vm350_vm1, %v358_v12, %v364_v36 }
 0x100   :  { %v682_v4 = vadd.f32 %v3760_v8, %v670_v21  ;;  %v353_v45 = vsel %vm350_vm1, %v3751_v60, %v346_v1  ;;  %v671_v61 = vsel %vm452_vm2, %v593_v7, %v666_v57  ;;  %v684_v6 = vadd.f32 %v681_v39, %v351_v51 }
 0x101   :  { %v3832_v48 = vsel %vm350_vm1, %v359_v9, %v365_v44  ;;  %v3835_v2 = vsel %vm350_vm1, %v373_v24, %v337_v19  ;;  %v3840_v1 = vsel %vm350_vm1, %v374_v10, %v339_v25  ;;  %v3843_v51 = vsel %vm350_vm1, %v382_v26, %v388_v41 }
 0x102   :  { %v691_v35 = vadd.f32 %v682_v4, %v352_v18  ;;  %v3261_v62 = vmul.f32 -1.442695, %v684_v6  ;;  %v3848_v12 = vsel %vm350_vm1, %v383_v11, %v389_v53  ;;  %v3851_v9 = vsel %vm350_vm1, %v413_v32, %v419_v5 }
 0x103   :  { %v3857_v24 = vsel %vm350_vm1, %v426_v29, %v3755_v63  ;;  %v3860_v10 = vsel %vm350_vm1, %v427_v47, %v331_v49  ;;  %v3863_v26 = vsel %vm350_vm1, %v428_v33, %v333_v50  ;;  %v3870_v60 = vsel %vm350_vm1, %v435_v30, %v441_v23  ;;  %v66_v33 = vld [vmem:[#allocation2 + $0x130] sm:$0x3c] }
 0x104   :  { %3468 = vpow2.f32 %v3261_v62  ;;  %v3873_v11 = vsel %vm350_vm1, %v436_v59, %v442_v14  ;;  %v3876_v29 = vsel %vm350_vm1, %v437_v42, %v443_v13  ;;  %v3262_v32 = vmul.f32 -1.442695, %v691_v35 }
 0x105   :  { %v3878_v63 = vrot.slane %v66_v33, 2 }
 0x106   :  { %3470 = vpow2.f32 %v3262_v32 }
 0x107   :  { %v683_v23 = vadd.f32 %v3878_v63, %v671_v61 }
 0x10e   :  { %v3469_v47 = vpop.eup %3468 }
 0x10f   :  { %v688_v49 = vadd.f32 1.0, %v3469_v47 }
 0x110   :  { %v3471_v50 = vpop.eup %3470 }
 0x111   :  { %3472 = vrcp.f32 %v688_v49  ;;  %v695_v16 = vadd.f32 1.0, %v3471_v50 }
 0x113   :  { %3474 = vrcp.f32 %v695_v16 }
 0x11b   :  { %v3473_v30 = vpop.eup %3472 }
 0x11c   :  { %v698_v7 = vmul.f32 %v3473_v30, %v683_v23 }
 0x11d   :  { %v3475_v14 = vpop.eup %3474 }
 0x11e   :  { %v699_v59 = vadd.f32 %v698_v7, %v353_v45  ;;  %v701_v42 = vsub.f32 1.0, %v3475_v14  ;;  %v703_v25 = vmul.f32 0.0, %v3475_v14 }
 0x120   :  { %3476 = vtanh.f32 %v699_v59 }
 0x12a   :  { %v3477_v5 = vpop.eup %3476 }
 0x12b   :  { %v702_v19 = vmul.f32 %v3477_v5, %v701_v42 }
 0x12d   :  { %v3881_v36 = vadd.f32 %v703_v25, %v702_v19 }
 0x12f   :  { %3263 = vmatmul.mubr.msk.f32.vlgmr.msra.gmra.mrb[8].mxu1 %vm103_vm0, %v3881_v36  ;;  %3264 = vmatmul.mubr.msk.f32.vlgmr.msra.gmra.mrb[10].mxu0 %vm103_vm0, %v3881_v36 }
 0x130   :  { %3370 = vmatpush1.bf16.msra.mxu1 %v3718_v38  ;;  %914 = vmatprep.mubr.f32.mxu1 %v3649_v0 }
 0x131   :  { %3376 = vmatprep.subr.bf16.mxu1 %v3699_v27  ;;  %3374 = vmatpush1.bf16.msra.mxu0 %v3695_v20 }
 0x132   :  { %1015 = vmatprep.mubr.f32.mxu0 %v3649_v0  ;;  %3380 = vmatprep.subr.bf16.mxu0 %v3709_v34 }
 0x133   :  { %3265 = vmatmul.mubr.msk.f32.vlgmr.msra.gmra.mrb[10].mxu1 %vm103_vm0, %v3881_v36 }
 0x134   :  { %3378 = vmatpush1.bf16.msra.mxu1 %v3715_v37  ;;  %1086 = vmatprep.mubr.f32.mxu1 %v3649_v0 }
 0x135   :  { %3384 = vmatprep.subr.bf16.mxu1 %v3693_v17 }
 0x202   :  { %v774_v41 = vpop.f32.mrb[8].mxu1  ;;  %v845_v44 = vpop.f32.mrb[10].mxu0 }
 0x203   :  { %v776_v53 = vpop.f32.mrb[9].mxu1  ;;  %v847_v39 = vpop.f32.mrb[11].mxu0 }
 0x204   :  { %v921_v21 = vsel %vm452_vm2, %v774_v41, %v847_v39 }
 0x205   :  { %v924_v57 = vadd.f32 %v921_v21, %v3757_v3 }
 0x206   :  { %v916_v18 = vpop.f32.mrb[10].mxu1 }
 0x207   :  { %v927_v4 = vadd.f32 %v924_v57, %v3787_v52  ;;  %v922_v45 = vsel %vm452_vm2, %v776_v53, %v916_v18  ;;  %v918_v61 = vpop.f32.mrb[11].mxu1 }
 0x208   :  { %v925_v13 = vadd.f32 %v922_v45, %v3760_v8  ;;  %v923_v6 = vsel %vm452_vm2, %v845_v44, %v918_v61 }
 0x209   :  { %v3266_v35 = vmul.f32 -1.442695, %v927_v4  ;;  %v926_v52 = vadd.f32 %v923_v6, %v3878_v63 }
 0x20a   :  { %v934_v62 = vadd.f32 %v925_v13, %v370_v31 }
 0x20b   :  { %3478 = vpow2.f32 %v3266_v35 }
 0x20c   :  { %v3267_v32 = vmul.f32 -1.442695, %v934_v62 }
 0x20e   :  { %3480 = vpow2.f32 %v3267_v32 }
 0x215   :  { %v3479_v47 = vpop.eup %3478 }
 0x216   :  { %v931_v49 = vadd.f32 1.0, %v3479_v47 }
 0x218   :  { %3482 = vrcp.f32 %v931_v49  ;;  %v3481_v33 = vpop.eup %3480 }
 0x219   :  { %v938_v50 = vadd.f32 1.0, %v3481_v33 }
 0x21b   :  { %3484 = vrcp.f32 %v938_v50 }
 0x222   :  { %v3483_v16 = vpop.eup %3482 }
 0x223   :  { %v941_v23 = vmul.f32 %v3483_v16, %v926_v52 }
 0x225   :  { %v942_v30 = vadd.f32 %v941_v23, %v3832_v48  ;;  %v3485_v7 = vpop.eup %3484 }
 0x226   :  { %v944_v59 = vsub.f32 1.0, %v3485_v7  ;;  %v946_v42 = vmul.f32 %v3485_v7, %v3881_v36 }
 0x227   :  { %3486 = vtanh.f32 %v942_v30 }
 0x231   :  { %v3487_v14 = vpop.eup %3486 }
 0x232   :  { %v945_v31 = vmul.f32 %v3487_v14, %v944_v59 }
 0x234   :  { %v3910_v5 = vadd.f32 %v946_v42, %v945_v31 }
 0x236   :  { %3268 = vmatmul.mubr.msk.f32.vlgmr.msra.gmra.mrb[12].mxu0 %vm103_vm0, %v3910_v5  ;;  %3269 = vmatmul.mubr.msk.f32.vlgmr.msra.gmra.mrb[12].mxu1 %vm103_vm0, %v3910_v5 }
 0x237   :  { %3382 = vmatpush1.bf16.msra.mxu0 %v3718_v38  ;;  %1157 = vmatprep.mubr.f32.mxu0 %v3649_v0 }
 0x238   :  { %3388 = vmatprep.subr.bf16.mxu0 %v3699_v27  ;;  %3386 = vmatpush1.bf16.msra.mxu1 %v3695_v20 }
 0x239   :  { %1258 = vmatprep.mubr.f32.mxu1 %v3649_v0  ;;  %3392 = vmatprep.subr.bf16.mxu1 %v3709_v34 }
 0x23a   :  { %3270 = vmatmul.mubr.msk.f32.vlgmr.msra.gmra.mrb[14].mxu0 %vm103_vm0, %v3910_v5 }
 0x23b   :  { %3390 = vmatpush1.bf16.msra.mxu0 %v3715_v37  ;;  %1329 = vmatprep.mubr.f32.mxu0 %v3649_v0 }
 0x23c   :  { %3396 = vmatprep.subr.bf16.mxu0 %v3693_v17 }
 0x309   :  { %v1017_v48 = vpop.f32.mrb[12].mxu0  ;;  %v1088_v19 = vpop.f32.mrb[12].mxu1 }
 0x30a   :  { %v1019_v25 = vpop.f32.mrb[13].mxu0  ;;  %v1090_v41 = vpop.f32.mrb[13].mxu1 }
 0x30b   :  { %v1164_v44 = vsel %vm452_vm2, %v1017_v48, %v1090_v41 }
 0x30c   :  { %v1167_v53 = vadd.f32 %v1164_v44, %v3757_v3 }
 0x30d   :  { %v1159_v39 = vpop.f32.mrb[14].mxu0 }
 0x30e   :  { %v1170_v21 = vadd.f32 %v1167_v53, %v3790_v54  ;;  %v1165_v57 = vsel %vm452_vm2, %v1019_v25, %v1159_v39  ;;  %v1161_v18 = vpop.f32.mrb[15].mxu0 }
 0x30f   :  { %v1168_v4 = vadd.f32 %v1165_v57, %v3760_v8  ;;  %v1166_v45 = vsel %vm452_vm2, %v1088_v19, %v1161_v18 }
 0x310   :  { %v3271_v61 = vmul.f32 -1.442695, %v1170_v21  ;;  %v1169_v47 = vadd.f32 %v1166_v45, %v3878_v63 }
 0x311   :  { %v1177_v13 = vadd.f32 %v1168_v4, %v3835_v2 }
 0x312   :  { %3488 = vpow2.f32 %v3271_v61 }
 0x313   :  { %v3272_v6 = vmul.f32 -1.442695, %v1177_v13 }
 0x315   :  { %3490 = vpow2.f32 %v3272_v6 }
 0x31c   :  { %v3489_v35 = vpop.eup %3488 }
 0x31d   :  { %v1174_v62 = vadd.f32 1.0, %v3489_v35 }
 0x31f   :  { %3492 = vrcp.f32 %v1174_v62  ;;  %v3491_v32 = vpop.eup %3490 }
 0x320   :  { %v1181_v54 = vadd.f32 1.0, %v3491_v32 }
 0x322   :  { %3494 = vrcp.f32 %v1181_v54 }
 0x329   :  { %v3493_v49 = vpop.eup %3492 }
 0x32a   :  { %v1184_v33 = vmul.f32 %v3493_v49, %v1169_v47 }
 0x32c   :  { %v1185_v50 = vadd.f32 %v1184_v33, %v3840_v1  ;;  %v3495_v52 = vpop.eup %3494 }
 0x32d   :  { %v1187_v16 = vsub.f32 1.0, %v3495_v52  ;;  %v1189_v30 = vmul.f32 %v3495_v52, %v3910_v5 }
 0x32e   :  { %3496 = vtanh.f32 %v1185_v50 }
 0x338   :  { %v3497_v23 = vpop.eup %3496 }
 0x339   :  { %v1188_v2 = vmul.f32 %v3497_v23, %v1187_v16 }
 0x33b   :  { %v3940_v7 = vadd.f32 %v1189_v30, %v1188_v2 }
 0x33d   :  { %3273 = vmatmul.mubr.msk.f32.vlgmr.msra.gmra.mrb[14].mxu1 %vm103_vm0, %v3940_v7  ;;  %3274 = vmatmul.mubr.msk.f32.vlgmr.msra.gmra.mrb[16].mxu0 %vm103_vm0, %v3940_v7 }
 0x33e   :  { %3394 = vmatpush1.bf16.msra.mxu1 %v3718_v38  ;;  %1400 = vmatprep.mubr.f32.mxu1 %v3649_v0 }
 0x33f   :  { %3400 = vmatprep.subr.bf16.mxu1 %v3699_v27  ;;  %3398 = vmatpush1.bf16.msra.mxu0 %v3695_v20 }
 0x340   :  { %1501 = vmatprep.mubr.f32.mxu0 %v3649_v0  ;;  %3404 = vmatprep.subr.bf16.mxu0 %v3709_v34 }
 0x341   :  { %3275 = vmatmul.mubr.msk.f32.vlgmr.msra.gmra.mrb[16].mxu1 %vm103_vm0, %v3940_v7 }
 0x342   :  { %3402 = vmatpush1.bf16.msra.mxu1 %v3715_v37  ;;  %1572 = vmatprep.mubr.f32.mxu1 %v3649_v0 }
 0x343   :  { %3408 = vmatprep.subr.bf16.mxu1 %v3693_v17 }
 0x410   :  { %v1260_v1 = vpop.f32.mrb[14].mxu1  ;;  %v1331_v59 = vpop.f32.mrb[16].mxu0 }
 0x411   :  { %v1262_v14 = vpop.f32.mrb[15].mxu1  ;;  %v1333_v31 = vpop.f32.mrb[17].mxu0 }
 0x412   :  { %v1407_v42 = vsel %vm452_vm2, %v1260_v1, %v1333_v31 }
 0x413   :  { %v1410_v48 = vadd.f32 %v1407_v42, %v3757_v3 }
 0x414   :  { %v1402_v19 = vpop.f32.mrb[16].mxu1 }
 0x415   :  { %v1413_v25 = vadd.f32 %v1410_v48, %v3793_v55  ;;  %v1408_v41 = vsel %vm452_vm2, %v1262_v14, %v1402_v19  ;;  %v1404_v44 = vpop.f32.mrb[17].mxu1 }
 0x416   :  { %v1411_v53 = vadd.f32 %v1408_v41, %v3760_v8  ;;  %v1409_v39 = vsel %vm452_vm2, %v1331_v59, %v1404_v44 }
 0x417   :  { %v3276_v21 = vmul.f32 -1.442695, %v1413_v25  ;;  %v1412_v13 = vadd.f32 %v1409_v39, %v3878_v63 }
 0x418   :  { %v1420_v57 = vadd.f32 %v1411_v53, %v3843_v51 }
 0x419   :  { %3498 = vpow2.f32 %v3276_v21 }
 0x41a   :  { %v3277_v18 = vmul.f32 -1.442695, %v1420_v57 }
 0x41c   :  { %3500 = vpow2.f32 %v3277_v18 }
 0x423   :  { %v3499_v4 = vpop.eup %3498 }
 0x424   :  { %v1417_v45 = vadd.f32 1.0, %v3499_v4 }
 0x426   :  { %3502 = vrcp.f32 %v1417_v45  ;;  %v3501_v61 = vpop.eup %3500 }
 0x427   :  { %v1424_v55 = vadd.f32 1.0, %v3501_v61 }
 0x429   :  { %3504 = vrcp.f32 %v1424_v55 }
 0x430   :  { %v3503_v6 = vpop.eup %3502 }
 0x431   :  { %v1427_v35 = vmul.f32 %v3503_v6, %v1412_v13 }
 0x433   :  { %v1428_v62 = vadd.f32 %v1427_v35, %v3848_v12  ;;  %v3505_v32 = vpop.eup %3504 }
 0x434   :  { %v1430_v54 = vsub.f32 1.0, %v3505_v32  ;;  %v1432_v49 = vmul.f32 %v3505_v32, %v3940_v7 }
 0x435   :  { %3506 = vtanh.f32 %v1428_v62 }
 0x43f   :  { %v3507_v47 = vpop.eup %3506 }
 0x440   :  { %v1431_v51 = vmul.f32 %v3507_v47, %v1430_v54 }
 0x442   :  { %v3970_v33 = vadd.f32 %v1432_v49, %v1431_v51 }
 0x444   :  { %3278 = vmatmul.mubr.msk.f32.vlgmr.msra.gmra.mrb[18].mxu0 %vm103_vm0, %v3970_v33  ;;  %3279 = vmatmul.mubr.msk.f32.vlgmr.msra.gmra.mrb[18].mxu1 %vm103_vm0, %v3970_v33 }
 0x445   :  { %3406 = vmatpush1.bf16.msra.mxu0 %v3718_v38  ;;  %1643 = vmatprep.mubr.f32.mxu0 %v3649_v0 }
 0x446   :  { %3412 = vmatprep.subr.bf16.mxu0 %v3699_v27  ;;  %3410 = vmatpush1.bf16.msra.mxu1 %v3695_v20 }
 0x447   :  { %1744 = vmatprep.mubr.f32.mxu1 %v3649_v0  ;;  %3416 = vmatprep.subr.bf16.mxu1 %v3709_v34 }
 0x448   :  { %3280 = vmatmul.mubr.msk.f32.vlgmr.msra.gmra.mrb[20].mxu0 %vm103_vm0, %v3970_v33 }
 0x449   :  { %3414 = vmatpush1.bf16.msra.mxu0 %v3715_v37  ;;  %1815 = vmatprep.mubr.f32.mxu0 %v3649_v0 }
 0x44a   :  { %3420 = vmatprep.subr.bf16.mxu0 %v3693_v17 }
 0x517   :  { %v1503_v12 = vpop.f32.mrb[18].mxu0  ;;  %v1574_v50 = vpop.f32.mrb[18].mxu1 }
 0x518   :  { %v1505_v52 = vpop.f32.mrb[19].mxu0  ;;  %v1576_v16 = vpop.f32.mrb[19].mxu1 }
 0x519   :  { %v1650_v23 = vsel %vm452_vm2, %v1503_v12, %v1576_v16 }
 0x51a   :  { %v1653_v2 = vadd.f32 %v1650_v23, %v3757_v3 }
 0x51b   :  { %v1645_v30 = vpop.f32.mrb[20].mxu0 }
 0x51c   :  { %v1656_v1 = vadd.f32 %v1653_v2, %v3797_v56  ;;  %v1651_v59 = vsel %vm452_vm2, %v1505_v52, %v1645_v30  ;;  %v1647_v14 = vpop.f32.mrb[21].mxu0 }
 0x51d   :  { %v1654_v31 = vadd.f32 %v1651_v59, %v3760_v8  ;;  %v1652_v42 = vsel %vm452_vm2, %v1574_v50, %v1647_v14 }
 0x51e   :  { %v3281_v48 = vmul.f32 -1.442695, %v1656_v1  ;;  %v1655_v39 = vadd.f32 %v1652_v42, %v3878_v63 }
 0x51f   :  { %v1663_v19 = vadd.f32 %v1654_v31, %v3807_v15 }
 0x520   :  { %3508 = vpow2.f32 %v3281_v48 }
 0x521   :  { %v3282_v25 = vmul.f32 -1.442695, %v1663_v19 }
 0x523   :  { %3510 = vpow2.f32 %v3282_v25 }
 0x52a   :  { %v3509_v41 = vpop.eup %3508 }
 0x52b   :  { %v1660_v44 = vadd.f32 1.0, %v3509_v41 }
 0x52d   :  { %3512 = vrcp.f32 %v1660_v44  ;;  %v3511_v53 = vpop.eup %3510 }
 0x52e   :  { %v1667_v56 = vadd.f32 1.0, %v3511_v53 }
 0x530   :  { %3514 = vrcp.f32 %v1667_v56 }
 0x537   :  { %v3513_v21 = vpop.eup %3512 }
 0x538   :  { %v1670_v57 = vmul.f32 %v3513_v21, %v1655_v39 }
 0x53a   :  { %v1671_v18 = vadd.f32 %v1670_v57, %v3811_v22  ;;  %v3515_v4 = vpop.eup %3514 }
 0x53b   :  { %v1673_v45 = vsub.f32 1.0, %v3515_v4  ;;  %v1675_v55 = vmul.f32 %v3515_v4, %v3970_v33 }
 0x53c   :  { %3516 = vtanh.f32 %v1671_v18 }
 0x546   :  { %v3517_v61 = vpop.eup %3516 }
 0x547   :  { %v1674_v15 = vmul.f32 %v3517_v61, %v1673_v45 }
 0x549   :  { %v4000_v13 = vadd.f32 %v1675_v55, %v1674_v15 }
 0x54b   :  { %3283 = vmatmul.mubr.msk.f32.vlgmr.msra.gmra.mrb[20].mxu1 %vm103_vm0, %v4000_v13  ;;  %3284 = vmatmul.mubr.msk.f32.vlgmr.msra.gmra.mrb[22].mxu0 %vm103_vm0, %v4000_v13 }
 0x54c   :  { %3418 = vmatpush1.bf16.msra.mxu1 %v3718_v38  ;;  %1886 = vmatprep.mubr.f32.mxu1 %v3649_v0 }
 0x54d   :  { %3424 = vmatprep.subr.bf16.mxu1 %v3699_v27  ;;  %3422 = vmatpush1.bf16.msra.mxu0 %v3695_v20 }
 0x54e   :  { %1987 = vmatprep.mubr.f32.mxu0 %v3649_v0  ;;  %3428 = vmatprep.subr.bf16.mxu0 %v3709_v34 }
 0x54f   :  { %3285 = vmatmul.mubr.msk.f32.vlgmr.msra.gmra.mrb[22].mxu1 %vm103_vm0, %v4000_v13 }
 0x550   :  { %3426 = vmatpush1.bf16.msra.mxu1 %v3715_v37  ;;  %2058 = vmatprep.mubr.f32.mxu1 %v3649_v0 }
 0x551   :  { %3432 = vmatprep.subr.bf16.mxu1 %v3693_v17 }
 0x61e   :  { %v1746_v22 = vpop.f32.mrb[20].mxu1  ;;  %v1817_v6 = vpop.f32.mrb[22].mxu0 }
 0x61f   :  { %v1748_v35 = vpop.f32.mrb[21].mxu1  ;;  %v1819_v62 = vpop.f32.mrb[23].mxu0 }
 0x620   :  { %v1893_v32 = vsel %vm452_vm2, %v1746_v22, %v1819_v62 }
 0x621   :  { %v1896_v54 = vadd.f32 %v1893_v32, %v3757_v3 }
 0x622   :  { %v1888_v47 = vpop.f32.mrb[22].mxu1 }
 0x623   :  { %v1899_v51 = vadd.f32 %v1896_v54, %v3800_v58  ;;  %v1894_v49 = vsel %vm452_vm2, %v1748_v35, %v1888_v47  ;;  %v1890_v12 = vpop.f32.mrb[23].mxu1 }
 0x624   :  { %v1897_v50 = vadd.f32 %v1894_v49, %v3760_v8  ;;  %v1895_v17 = vsel %vm452_vm2, %v1817_v6, %v1890_v12 }
 0x625   :  { %v3286_v52 = vmul.f32 -1.442695, %v1899_v51  ;;  %v1898_v59 = vadd.f32 %v1895_v17, %v3878_v63  ;;  %v58_v17 = vld [vmem:[#allocation2 + $0xf8] sm:$0xff] }
 0x626   :  { %v1906_v16 = vadd.f32 %v1897_v50, %v3814_v28 }
 0x627   :  { %3518 = vpow2.f32 %v3286_v52 }
 0x628   :  { %v3287_v23 = vmul.f32 -1.442695, %v1906_v16  ;;  %v55_v16 = vld [vmem:[#allocation2 + $0xc0] sm:$0xff] }
 0x62a   :  { %3520 = vpow2.f32 %v3287_v23  ;;  %v56_v23 = vld [vmem:[#allocation2 + $0xf0] sm:$0xff] }
 0x631   :  { %v3519_v2 = vpop.eup %3518 }
 0x632   :  { %v1903_v30 = vadd.f32 1.0, %v3519_v2  ;;  %v3447_v2 = vpack.c.bf16 %v56_v23, %v55_v16  ;;  %v4135_v23 = vld [vmem:[#allocation2 + $0x150] sm:$0x1f] }
 0x634   :  { %3522 = vrcp.f32 %v1903_v30  ;;  %v3521_v1 = vpop.eup %3520 }
 0x635   :  { %v1910_v58 = vadd.f32 1.0, %v3521_v1 }
 0x637   :  { %3524 = vrcp.f32 %v1910_v58 }
 0x63e   :  { %v3523_v14 = vpop.eup %3522 }
 0x63f   :  { %v1913_v31 = vmul.f32 %v3523_v14, %v1898_v59 }
 0x641   :  { %v1914_v42 = vadd.f32 %v1913_v31, %v3851_v9  ;;  %v3525_v48 = vpop.eup %3524 }
 0x642   :  { %v1916_v19 = vsub.f32 1.0, %v3525_v48  ;;  %v1918_v41 = vmul.f32 %v3525_v48, %v4000_v13 }
 0x643   :  { %3526 = vtanh.f32 %v1914_v42 }
 0x64d   :  { %v3527_v25 = vpop.eup %3526 }
 0x64e   :  { %v1917_v28 = vmul.f32 %v3527_v25, %v1916_v19 }
 0x650   :  { %v4030_v44 = vadd.f32 %v1918_v41, %v1917_v28 }
 0x652   :  { %3288 = vmatmul.mubr.msk.f32.vlgmr.msra.gmra.mrb[24].mxu0 %vm103_vm0, %v4030_v44  ;;  %3289 = vmatmul.mubr.msk.f32.vlgmr.msra.gmra.mrb[24].mxu1 %vm103_vm0, %v4030_v44 }
 0x653   :  { %3430 = vmatpush1.bf16.msra.mxu0 %v3718_v38  ;;  %2129 = vmatprep.mubr.f32.mxu0 %v3649_v0 }
 0x654   :  { %3436 = vmatprep.subr.bf16.mxu0 %v3699_v27  ;;  %3434 = vmatpush1.bf16.msra.mxu1 %v3695_v20 }
 0x655   :  { %2230 = vmatprep.mubr.f32.mxu1 %v3649_v0  ;;  %3440 = vmatprep.subr.bf16.mxu1 %v3709_v34 }
 0x656   :  { %3290 = vmatmul.mubr.msk.f32.vlgmr.msra.gmra.mrb[26].mxu0 %vm103_vm0, %v4030_v44 }
 0x657   :  { %3438 = vmatpush1.bf16.msra.mxu0 %v3715_v37  ;;  %2301 = vmatprep.mubr.f32.mxu0 %v3649_v0 }
 0x725   :  { %v1989_v9 = vpop.f32.mrb[24].mxu0  ;;  %v2060_v53 = vpop.f32.mrb[24].mxu1 }
 0x726   :  { %v1991_v56 = vpop.f32.mrb[25].mxu0  ;;  %v2062_v39 = vpop.f32.mrb[25].mxu1 }
 0x727   :  { %v2136_v27 = vsel %vm452_vm2, %v1989_v9, %v2062_v39 }
 0x728   :  { %v2139_v20 = vadd.f32 %v2136_v27, %v3757_v3 }
 0x729   :  { %v2131_v21 = vpop.f32.mrb[26].mxu0 }
 0x72a   :  { %v2142_v57 = vadd.f32 %v2139_v20, %v3857_v24  ;;  %v2137_v34 = vsel %vm452_vm2, %v1991_v56, %v2131_v21  ;;  %v2133_v18 = vpop.f32.mrb[27].mxu0 }
 0x72b   :  { %v2140_v37 = vadd.f32 %v2137_v34, %v3760_v8  ;;  %v2138_v4 = vsel %vm452_vm2, %v2060_v53, %v2133_v18 }
 0x72c   :  { %v3291_v45 = vmul.f32 -1.442695, %v2142_v57  ;;  %v2141_v35 = vadd.f32 %v2138_v4, %v3878_v63 }
 0x72d   :  { %v2149_v61 = vadd.f32 %v2140_v37, %v3860_v10 }
 0x72e   :  { %3528 = vpow2.f32 %v3291_v45 }
 0x72f   :  { %v3292_v15 = vmul.f32 -1.442695, %v2149_v61 }
 0x731   :  { %3530 = vpow2.f32 %v3292_v15  ;;  %v2412_v15 = vrot.slane %v4030_v44, 6 }
 0x738   :  { %v3529_v55 = vpop.eup %3528 }
 0x739   :  { %v2146_v22 = vadd.f32 1.0, %v3529_v55  ;;  %v2427_v55 = vrot.slane %v4000_v13, 4 }
 0x73b   :  { %3532 = vrcp.f32 %v2146_v22  ;;  %v3531_v6 = vpop.eup %3530 }
 0x73c   :  { %v2153_v24 = vadd.f32 1.0, %v3531_v6 }
 0x73e   :  { %3534 = vrcp.f32 %v2153_v24  ;;  %v2429_v24 = vrot.slane %v3881_v36, 4 }
 0x745   :  { %v3533_v62 = vpop.eup %3532 }
 0x746   :  { %v2156_v32 = vmul.f32 %v3533_v62, %v2141_v35 }
 0x748   :  { %v2157_v54 = vadd.f32 %v2156_v32, %v3863_v26  ;;  %v3535_v47 = vpop.eup %3534  ;;  %v57_v26 = vld [vmem:[#allocation2 + $0xc8] sm:$0xff] }
 0x749   :  { %v2159_v51 = vsub.f32 1.0, %v3535_v47  ;;  %v2161_v12 = vmul.f32 %v3535_v47, %v4030_v44  ;;  %v3443_v52 = vpack.c.bf16 %v58_v17, %v57_v26 }
 0x74a   :  { %3536 = vtanh.f32 %v2157_v54  ;;  %v2424_v54 = vsel %vm350_vm1, %v4000_v13, %v2412_v15 }
 0x74b   :  { %3444 = vmatprep.subr.bf16.mxu0 %v3443_v52 }
 0x754   :  { %v3537_v49 = vpop.eup %3536 }
 0x755   :  { %v2160_v10 = vmul.f32 %v3537_v49, %v2159_v51  ;;  %v4112_v51 = vld [vmem:[%s4246_s1] sm:$0xff] }
 0x756   :  { %v63_v49 = vld [vmem:[#allocation2 + $0x121] ss:$0 sm:$0xff] }
 0x757   :  { %v4059_v50 = vadd.f32 %v2161_v12, %v2160_v10 }
 0x759   :  { %3293 = vmatmul.mubr.msk.f32.vlgmr.msra.gmra.mrb[26].mxu1 %vm103_vm0, %v4059_v50  ;;  %3294 = vmatmul.mubr.msk.f32.vlgmr.msra.gmra.mrb[28].mxu0 %vm103_vm0, %v4059_v50  ;;  %v2414_v32 = vrot.slane %v4059_v50, 4 }
 0x75a   :  { %3442 = vmatpush1.bf16.msra.mxu1 %v3718_v38  ;;  %2372 = vmatprep.mubr.f32.mxu1 %v3649_v0 }
 0x75b   :  { %3446 = vmatpush3.bf16.msra.mxu0 %v3443_v52  ;;  %3330 = vmatprep.subr.msk.mxu1 %vm2652_vm7, %v4135_v23 }
 0x75c   :  { %3448 = vmatprep.subr.bf16.mxu0 %v3447_v2 }
 0x75d   :  { %3295 = vmatmul.mubr.msk.f32.vlgmr.msra.gmra.mrb[28].mxu1 %vm103_vm0, %v4059_v50 }
 0x75e   :  { %3332 = vmatprep.mubr.msk.f32.mxu1 %vm2607_vm5, %v4112_v51  ;;  %3331 = vmatpush3.msk.msra.mxu1 %vm2652_vm7, %v4135_v23 }
 0x82c   :  { %v2232_v30 = vpop.f32.mrb[26].mxu1  ;;  %v2303_v1 = vpop.f32.mrb[28].mxu0 }
 0x82d   :  { %v2234_v58 = vpop.f32.mrb[27].mxu1  ;;  %v2305_v59 = vpop.f32.mrb[29].mxu0 }
 0x82e   :  { %v2379_v38 = vsel %vm452_vm2, %v2232_v30, %v2305_v59 }
 0x82f   :  { %v2382_v0 = vadd.f32 %v2379_v38, %v3757_v3 }
 0x830   :  { %v2374_v14 = vpop.f32.mrb[28].mxu1 }
 0x831   :  { %v2385_v31 = vadd.f32 %v2382_v0, %v3870_v60  ;;  %v2380_v42 = vsel %vm452_vm2, %v2234_v58, %v2374_v14  ;;  %v2376_v48 = vpop.f32.mrb[29].mxu1 }
 0x832   :  { %v2383_v19 = vadd.f32 %v2380_v42, %v3760_v8  ;;  %v2381_v25 = vsel %vm452_vm2, %v2303_v1, %v2376_v48 }
 0x833   :  { %v3296_v28 = vmul.f32 -1.442695, %v2385_v31  ;;  %v2384_v39 = vadd.f32 %v2381_v25, %v3878_v63  ;;  %v2406_v63 = vrot.slane %v3910_v5, 6 }
 0x834   :  { %v2392_v41 = vadd.f32 %v2383_v19, %v3873_v11  ;;  %v2410_v11 = vrot.slane %v3970_v33, 2 }
 0x835   :  { %3538 = vpow2.f32 %v3296_v28  ;;  %v2419_v5 = vsel %vm350_vm1, %v3881_v36, %v2406_v63  ;;  %v2425_v36 = vsel %vm2420_vm3, %v2424_v54, %v2414_v32 }
 0x836   :  { %v3297_v9 = vmul.f32 -1.442695, %v2392_v41  ;;  %v2434_v45 = vsel %vm350_vm1, %v2410_v11, %v3940_v7 }
 0x837   :  { %v2435_v22 = vsel %vm2420_vm3, %v2434_v45, %v2406_v63 }
 0x838   :  { %3540 = vpow2.f32 %v3297_v9 }
 0x83f   :  { %v3539_v53 = vpop.eup %3538 }
 0x840   :  { %v2389_v3 = vadd.f32 1.0, %v3539_v53 }
 0x842   :  { %3542 = vrcp.f32 %v2389_v3  ;;  %v3541_v56 = vpop.eup %3540 }
 0x843   :  { %v2396_v60 = vadd.f32 1.0, %v3541_v56 }
 0x845   :  { %3544 = vrcp.f32 %v2396_v60 }
 0x84c   :  { %v3543_v27 = vpop.eup %3542 }
 0x84d   :  { %v2399_v20 = vmul.f32 %v3543_v27, %v2384_v39 }
 0x84f   :  { %v2400_v8 = vadd.f32 %v2399_v20, %v3876_v29  ;;  %v3545_v21 = vpop.eup %3544  ;;  %v2408_v29 = vrot.slane %v3940_v7, 4  ;;  %v2436_v7 = vsel %vm2422_vm4, %v2435_v22, %v2429_v24 }
 0x850   :  { %v2402_v57 = vsub.f32 1.0, %v3545_v21  ;;  %v2404_v37 = vmul.f32 %v3545_v21, %v4059_v50 }
 0x851   :  { %3546 = vtanh.f32 %v2400_v8  ;;  %v2421_v44 = vsel %vm2420_vm3, %v2419_v5, %v2408_v29 }
 0x852   :  { %v2423_v62 = vsel %vm2422_vm4, %v2421_v44, %v2410_v11 }
 0x85b   :  { %v3547_v34 = vpop.eup %3546 }
 0x85c   :  { %v2403_v18 = vmul.f32 %v3547_v34, %v2402_v57 }
 0x85e   :  { %v2405_v4 = vadd.f32 %v2404_v37, %v2403_v18 }
 0x860   :  { %v2417_v61 = vrot.slane %v2405_v4, 2 }
 0x862   :  { %v2431_v33 = vsel %vm350_vm1, %v2417_v61, %v4059_v50  ;;  %v2426_v47 = vsel %vm2422_vm4, %v2425_v36, %v2417_v61  ;;  %v4118_v50 = vld [vmem:[#allocation2 + $0x126] ss:$0 sm:$0xff] }
 0x863   :  { %v2432_v6 = vsel %vm2420_vm3, %v2431_v33, %v2412_v15 }
 0x864   :  { %v2433_v35 = vsel %vm2422_vm4, %v2432_v6, %v2427_v55 }
 0x865   :  { %3320 = vmatprep.mubr.msk.f32.mxu0 %vm103_vm0, %v2433_v35 }
 0x866   :  { %3321 = vmatmul.mubr.msk.f32.vlgmr.msra.gmra.mrb[30].mxu0 %vm103_vm0, %v2436_v7 }
 0x867   :  { %3450 = vmatpush3.bf16.msra.mxu0 %v3447_v2  ;;  %3327 = vmatprep.mubr.msk.f32.mxu0 %vm103_vm0, %v2423_v62 }
 0x86e   :  { %3328 = vmatmul.mubr.msk.f32.vlgmr.msra.gmra.mrb[30].mxu0 %vm103_vm0, %v2426_v47 }
 0x941   :  { %v3329_v10 = vpop.f32.mrb[30].mxu0 }
 0x942   :  { %v4116_v12 = vadd.f32 %v3329_v10, %v63_v49  ;;  %v2590_v13 = vpop.f32.mrb[31].mxu0 }
 0x943   :  { %v4120_v26 = vadd.f32 %v2590_v13, %v63_v49 }
 0x944   :  { %2602 = vst [vmem:[%s4248_s3 + $0x8] sm:$0xff] %v4116_v12 }
 0x945   :  { %2601 = vst [vmem:[%s4248_s3] sm:$0xff] %v4120_v26  ;;  %v2754_v17 = vadd.f32 %v4120_v26, %v4118_v50  ;;  %v2814_v6 = vrot.slane %v4120_v26, 3  ;;  %v2813_v62 = vrot.slane %v4120_v26, 2 }
 0x947   :  { %v2765_v52 = vrot.slane %v2754_v17, %v79_v46  ;;  %v2758_v16 = vrot.slane %v2754_v17, %v3741_v43 }
 0x949   :  { %2767 = vbcast.lane.b32.xlu0 %v2765_v52, 256 }
 0x94d   :  { %2760 = vbcast.lane.b32.xlu0 %v2758_v16, 256 }
 0x9bb   :  { %v2768_v2 = vpop.permute.xlu0 %2767 }
 0x9bc   :  { %v2770_v30 = vadd.f32 %v2768_v2, %v4135_v23 }
 0x9be   :  { %v2779_v1 = vsel %vm2771_vm6, %v2770_v30, -inf }
 0x9bf   :  { %v2780_v58 = vrot.slane %v2779_v1, 4  ;;  %v2761_v59 = vpop.permute.xlu0 %2760 }
 0x9c0   :  { %v2769_v38 = vadd.f32 %v2761_v59, %v4135_v23 }
 0x9c1   :  { %v2781_v0 = vmax.f32 %v2779_v1, %v2780_v58 }
 0x9c2   :  { %v2772_v40 = vsel %vm2771_vm6, %v2769_v38, -inf }
 0x9c3   :  { %v2782_v46 = vrot.slane %v2781_v0, 2  ;;  %v2773_v14 = vrot.slane %v2772_v40, 4 }
 0x9c5   :  { %v2783_v31 = vmax.f32 %v2781_v0, %v2782_v46  ;;  %v2774_v42 = vmax.f32 %v2772_v40, %v2773_v14 }
 0x9c7   :  { %v2784_v48 = vrot.slane %v2783_v31, 1  ;;  %v2775_v19 = vrot.slane %v2774_v42, 2 }
 0x9c9   :  { %v2785_v25 = vmax.f32 %v2783_v31, %v2784_v48  ;;  %v2776_v28 = vmax.f32 %v2774_v42, %v2775_v19 }
 0x9cb   :  { %v2787_v41 = vsub.f32 %v2770_v30, %v2785_v25  ;;  %v2777_v9 = vrot.slane %v2776_v28, 1 }
 0x9cd   :  { %v2790_v53 = vmul.f32 1.442695, %v2787_v41  ;;  %v2778_v3 = vmax.f32 %v2776_v28, %v2777_v9 }
 0x9cf   :  { %3548 = vpow2.f32 %v2790_v53  ;;  %v2786_v56 = vsub.f32 %v2769_v38, %v2778_v3 }
 0x9d1   :  { %v2788_v60 = vmul.f32 1.442695, %v2786_v56 }
 0x9d3   :  { %3550 = vpow2.f32 %v2788_v60 }
 0x9d9   :  { %v3549_v39 = vpop.eup %3548 }
 0x9da   :  { %v2799_v27 = vsel %vm2771_vm6, %v3549_v39, 0.0 }
 0x9db   :  { %v2800_v20 = vrot.slane %v2799_v27, 4 }
 0x9dd   :  { %v3551_v8 = vpop.eup %3550  ;;  %v2801_v21 = vadd.f32 %v2800_v20, %v2799_v27 }
 0x9de   :  { %v2792_v57 = vsel %vm2771_vm6, %v3551_v8, 0.0 }
 0x9df   :  { %v2793_v34 = vrot.slane %v2792_v57, 4  ;;  %v2802_v11 = vrot.slane %v2801_v21, 2 }
 0x9e1   :  { %v2803_v18 = vadd.f32 %v2802_v11, %v2801_v21  ;;  %v2794_v37 = vadd.f32 %v2793_v34, %v2792_v57 }
 0x9e3   :  { %v2804_v4 = vrot.slane %v2803_v18, 1  ;;  %v2795_v45 = vrot.slane %v2794_v37, 2 }
 0x9e5   :  { %v2805_v61 = vadd.f32 %v2804_v4, %v2803_v18  ;;  %v2796_v63 = vadd.f32 %v2795_v45, %v2794_v37  ;;  %v2876_v45 = vrot.slane %v4120_v26, 5 }
 0x9e7   :  { %3552 = vlog2.f32 %v2805_v61  ;;  %v2797_v15 = vrot.slane %v2796_v63, 1 }
 0x9e9   :  { %v2798_v29 = vadd.f32 %v2797_v15, %v2796_v63 }
 0x9eb   :  { %3554 = vlog2.f32 %v2798_v29 }
 0x9f1   :  { %v3553_v55 = vpop.eup %3552 }
 0x9f2   :  { %v2809_v33 = vmul.f32 0.6931472, %v3553_v55 }
 0x9f4   :  { %v2811_v22 = vadd.f32 %v2809_v33, %v2785_v25  ;;  %v2875_v33 = vrot.slane %v4120_v26, 4 }
 0x9f5   :  { %v3555_v24 = vpop.eup %3554 }
 0x9f6   :  { %v2818_v35 = vadd.f32 %v2814_v6, %v2811_v22  ;;  %v2807_v5 = vmul.f32 0.6931472, %v3555_v24 }
 0x9f8   :  { %v2829_v7 = vrot.slane %v2818_v35, %v3741_v43  ;;  %v2810_v44 = vadd.f32 %v2807_v5, %v2778_v3 }
 0x9fa   :  { %2831 = vbcast.lane.b32.xlu1 %v2829_v7, 256  ;;  %v2817_v32 = vadd.f32 %v2813_v62, %v2810_v44 }
 0x9fc   :  { %v2822_v54 = vrot.slane %v2817_v32, %v3741_v43 }
 0x9fe   :  { %2824 = vbcast.lane.b32.xlu1 %v2822_v54, 256 }
 0xa6c   :  { %v2832_v36 = vpop.permute.xlu1 %2831 }
 0xa6d   :  { %v2834_v47 = vadd.f32 %v2832_v36, %v4135_v23 }
 0xa6f   :  { %v2842_v49 = vsel %vm2771_vm6, %v2834_v47, -inf }
 0xa70   :  { %v2843_v10 = vrot.slane %v2842_v49, 4  ;;  %v2825_v13 = vpop.permute.xlu1 %2824 }
 0xa71   :  { %v2833_v17 = vadd.f32 %v2825_v13, %v4135_v23 }
 0xa72   :  { %v2844_v52 = vmax.f32 %v2842_v49, %v2843_v10 }
 0xa73   :  { %v2835_v16 = vsel %vm2771_vm6, %v2833_v17, -inf }
 0xa74   :  { %v2845_v2 = vrot.slane %v2844_v52, 2  ;;  %v2836_v30 = vrot.slane %v2835_v16, 4 }
 0xa76   :  { %v2846_v1 = vmax.f32 %v2844_v52, %v2845_v2  ;;  %v2837_v58 = vmax.f32 %v2835_v16, %v2836_v30 }
 0xa78   :  { %v2847_v59 = vrot.slane %v2846_v1, 1  ;;  %v2838_v38 = vrot.slane %v2837_v58, 2 }
 0xa7a   :  { %v2848_v0 = vmax.f32 %v2846_v1, %v2847_v59  ;;  %v2839_v40 = vmax.f32 %v2837_v58, %v2838_v38 }
 0xa7c   :  { %v2850_v46 = vsub.f32 %v2834_v47, %v2848_v0  ;;  %v2840_v14 = vrot.slane %v2839_v40, 1 }
 0xa7e   :  { %v2853_v31 = vmul.f32 1.442695, %v2850_v46  ;;  %v2841_v42 = vmax.f32 %v2839_v40, %v2840_v14 }
 0xa80   :  { %3556 = vpow2.f32 %v2853_v31  ;;  %v2849_v48 = vsub.f32 %v2833_v17, %v2841_v42 }
 0xa82   :  { %v2851_v19 = vmul.f32 1.442695, %v2849_v48 }
 0xa84   :  { %3558 = vpow2.f32 %v2851_v19 }
 0xa8a   :  { %v3557_v25 = vpop.eup %3556 }
 0xa8b   :  { %v2862_v28 = vsel %vm2771_vm6, %v3557_v25, 0.0 }
 0xa8c   :  { %v2863_v41 = vrot.slane %v2862_v28, 4 }
 0xa8e   :  { %v3559_v9 = vpop.eup %3558  ;;  %v2864_v53 = vadd.f32 %v2863_v41, %v2862_v28 }
 0xa8f   :  { %v2855_v3 = vsel %vm2771_vm6, %v3559_v9, 0.0 }
 0xa90   :  { %v2856_v56 = vrot.slane %v2855_v3, 4  ;;  %v2865_v60 = vrot.slane %v2864_v53, 2 }
 0xa92   :  { %v2866_v39 = vadd.f32 %v2865_v60, %v2864_v53  ;;  %v2857_v27 = vadd.f32 %v2856_v56, %v2855_v3 }
 0xa94   :  { %v2867_v20 = vrot.slane %v2866_v39, 1  ;;  %v2858_v8 = vrot.slane %v2857_v27, 2 }
 0xa96   :  { %v2868_v21 = vadd.f32 %v2867_v20, %v2866_v39  ;;  %v2859_v57 = vadd.f32 %v2858_v8, %v2857_v27  ;;  %v2938_v8 = vrot.slane %v4120_v26, 7 }
 0xa98   :  { %3560 = vlog2.f32 %v2868_v21  ;;  %v2860_v34 = vrot.slane %v2859_v57, 1 }
 0xa9a   :  { %v2861_v11 = vadd.f32 %v2860_v34, %v2859_v57 }
 0xa9c   :  { %3562 = vlog2.f32 %v2861_v11 }
 0xaa2   :  { %v3561_v18 = vpop.eup %3560 }
 0xaa3   :  { %v2872_v37 = vmul.f32 0.6931472, %v3561_v18 }
 0xaa5   :  { %v2874_v4 = vadd.f32 %v2872_v37, %v2848_v0  ;;  %v2937_v37 = vrot.slane %v4120_v26, 6 }
 0xaa6   :  { %v3563_v61 = vpop.eup %3562 }
 0xaa7   :  { %v2880_v63 = vadd.f32 %v2876_v45, %v2874_v4  ;;  %v2870_v15 = vmul.f32 0.6931472, %v3563_v61 }
 0xaa9   :  { %v2891_v29 = vrot.slane %v2880_v63, %v3741_v43  ;;  %v2873_v55 = vadd.f32 %v2870_v15, %v2841_v42 }
 0xaab   :  { %2893 = vbcast.lane.b32.xlu0 %v2891_v29, 256  ;;  %v2879_v22 = vadd.f32 %v2875_v33, %v2873_v55 }
 0xaad   :  { %v2884_v6 = vrot.slane %v2879_v22, %v3741_v43 }
 0xaaf   :  { %2886 = vbcast.lane.b32.xlu1 %v2884_v6, 256 }
 0xb1d   :  { %v2894_v24 = vpop.permute.xlu0 %2893 }
 0xb1e   :  { %v2896_v35 = vadd.f32 %v2894_v24, %v4135_v23 }
 0xb20   :  { %v2904_v5 = vsel %vm2771_vm6, %v2896_v35, -inf }
 0xb21   :  { %v2905_v7 = vrot.slane %v2904_v5, 4  ;;  %v2887_v44 = vpop.permute.xlu1 %2886 }
 0xb22   :  { %v2895_v62 = vadd.f32 %v2887_v44, %v4135_v23 }
 0xb23   :  { %v2906_v32 = vmax.f32 %v2904_v5, %v2905_v7 }
 0xb24   :  { %v2897_v54 = vsel %vm2771_vm6, %v2895_v62, -inf }
 0xb25   :  { %v2907_v36 = vrot.slane %v2906_v32, 2  ;;  %v2898_v47 = vrot.slane %v2897_v54, 4 }
 0xb27   :  { %v2908_v49 = vmax.f32 %v2906_v32, %v2907_v36  ;;  %v2899_v10 = vmax.f32 %v2897_v54, %v2898_v47 }
 0xb29   :  { %v2909_v13 = vrot.slane %v2908_v49, 1  ;;  %v2900_v17 = vrot.slane %v2899_v10, 2 }
 0xb2b   :  { %v2910_v52 = vmax.f32 %v2908_v49, %v2909_v13  ;;  %v2901_v16 = vmax.f32 %v2899_v10, %v2900_v17 }
 0xb2d   :  { %v2912_v2 = vsub.f32 %v2896_v35, %v2910_v52  ;;  %v2902_v30 = vrot.slane %v2901_v16, 1 }
 0xb2f   :  { %v2915_v1 = vmul.f32 1.442695, %v2912_v2  ;;  %v2903_v58 = vmax.f32 %v2901_v16, %v2902_v30 }
 0xb31   :  { %3564 = vpow2.f32 %v2915_v1  ;;  %v2911_v59 = vsub.f32 %v2895_v62, %v2903_v58 }
 0xb33   :  { %v2913_v38 = vmul.f32 1.442695, %v2911_v59 }
 0xb35   :  { %3566 = vpow2.f32 %v2913_v38 }
 0xb3b   :  { %v3565_v0 = vpop.eup %3564 }
 0xb3c   :  { %v2924_v40 = vsel %vm2771_vm6, %v3565_v0, 0.0 }
 0xb3d   :  { %v2925_v46 = vrot.slane %v2924_v40, 4 }
 0xb3f   :  { %v3567_v14 = vpop.eup %3566  ;;  %v2926_v31 = vadd.f32 %v2925_v46, %v2924_v40 }
 0xb40   :  { %v2917_v42 = vsel %vm2771_vm6, %v3567_v14, 0.0 }
 0xb41   :  { %v2918_v48 = vrot.slane %v2917_v42, 4  ;;  %v2927_v19 = vrot.slane %v2926_v31, 2 }
 0xb43   :  { %v2928_v25 = vadd.f32 %v2927_v19, %v2926_v31  ;;  %v2919_v28 = vadd.f32 %v2918_v48, %v2917_v42 }
 0xb45   :  { %v2929_v41 = vrot.slane %v2928_v25, 1  ;;  %v2920_v9 = vrot.slane %v2919_v28, 2 }
 0xb47   :  { %v2930_v53 = vadd.f32 %v2929_v41, %v2928_v25  ;;  %v2921_v3 = vadd.f32 %v2920_v9, %v2919_v28  ;;  %v3000_v9 = vrot.slane %v4116_v12, 1 }
 0xb49   :  { %3568 = vlog2.f32 %v2930_v53  ;;  %v2922_v56 = vrot.slane %v2921_v3, 1 }
 0xb4b   :  { %v2923_v60 = vadd.f32 %v2922_v56, %v2921_v3 }
 0xb4d   :  { %3570 = vlog2.f32 %v2923_v60 }
 0xb53   :  { %v3569_v39 = vpop.eup %3568 }
 0xb54   :  { %v2934_v27 = vmul.f32 0.6931472, %v3569_v39 }
 0xb56   :  { %v2936_v20 = vadd.f32 %v2934_v27, %v2910_v52 }
 0xb57   :  { %v3571_v21 = vpop.eup %3570 }
 0xb58   :  { %v2942_v57 = vadd.f32 %v2938_v8, %v2936_v20  ;;  %v2932_v34 = vmul.f32 0.6931472, %v3571_v21 }
 0xb5a   :  { %v2953_v11 = vrot.slane %v2942_v57, %v3741_v43  ;;  %v2935_v18 = vadd.f32 %v2932_v34, %v2903_v58 }
 0xb5c   :  { %2955 = vbcast.lane.b32.xlu0 %v2953_v11, 256  ;;  %v2941_v4 = vadd.f32 %v2937_v37, %v2935_v18 }
 0xb5e   :  { %v2946_v45 = vrot.slane %v2941_v4, %v3741_v43 }
 0xb60   :  { %2948 = vbcast.lane.b32.xlu1 %v2946_v45, 256 }
 0xbce   :  { %v2956_v61 = vpop.permute.xlu0 %2955 }
 0xbcf   :  { %v2958_v63 = vadd.f32 %v2956_v61, %v4135_v23 }
 0xbd1   :  { %v2966_v15 = vsel %vm2771_vm6, %v2958_v63, -inf }
 0xbd2   :  { %v2967_v29 = vrot.slane %v2966_v15, 4  ;;  %v2949_v55 = vpop.permute.xlu1 %2948 }
 0xbd3   :  { %v2957_v33 = vadd.f32 %v2949_v55, %v4135_v23 }
 0xbd4   :  { %v2968_v22 = vmax.f32 %v2966_v15, %v2967_v29 }
 0xbd5   :  { %v2959_v6 = vsel %vm2771_vm6, %v2957_v33, -inf }
 0xbd6   :  { %v2969_v24 = vrot.slane %v2968_v22, 2  ;;  %v2960_v35 = vrot.slane %v2959_v6, 4 }
 0xbd8   :  { %v2970_v5 = vmax.f32 %v2968_v22, %v2969_v24  ;;  %v2961_v7 = vmax.f32 %v2959_v6, %v2960_v35 }
 0xbda   :  { %v2971_v44 = vrot.slane %v2970_v5, 1  ;;  %v2962_v62 = vrot.slane %v2961_v7, 2 }
 0xbdc   :  { %v2972_v32 = vmax.f32 %v2970_v5, %v2971_v44  ;;  %v2963_v54 = vmax.f32 %v2961_v7, %v2962_v62 }
 0xbde   :  { %v2974_v36 = vsub.f32 %v2958_v63, %v2972_v32  ;;  %v2964_v47 = vrot.slane %v2963_v54, 1 }
 0xbe0   :  { %v2977_v49 = vmul.f32 1.442695, %v2974_v36  ;;  %v2965_v10 = vmax.f32 %v2963_v54, %v2964_v47 }
 0xbe2   :  { %3572 = vpow2.f32 %v2977_v49  ;;  %v2973_v13 = vsub.f32 %v2957_v33, %v2965_v10 }
 0xbe4   :  { %v2975_v17 = vmul.f32 1.442695, %v2973_v13 }
 0xbe6   :  { %3574 = vpow2.f32 %v2975_v17 }
 0xbec   :  { %v3573_v52 = vpop.eup %3572 }
 0xbed   :  { %v2986_v16 = vsel %vm2771_vm6, %v3573_v52, 0.0 }
 0xbee   :  { %v2987_v2 = vrot.slane %v2986_v16, 4 }
 0xbf0   :  { %v3575_v30 = vpop.eup %3574  ;;  %v2988_v1 = vadd.f32 %v2987_v2, %v2986_v16 }
 0xbf1   :  { %v2979_v58 = vsel %vm2771_vm6, %v3575_v30, 0.0 }
 0xbf2   :  { %v2980_v59 = vrot.slane %v2979_v58, 4  ;;  %v2989_v38 = vrot.slane %v2988_v1, 2 }
 0xbf4   :  { %v2990_v0 = vadd.f32 %v2989_v38, %v2988_v1  ;;  %v2981_v40 = vadd.f32 %v2980_v59, %v2979_v58 }
 0xbf6   :  { %v2991_v46 = vrot.slane %v2990_v0, 1  ;;  %v2982_v14 = vrot.slane %v2981_v40, 2 }
 0xbf8   :  { %v2992_v31 = vadd.f32 %v2991_v46, %v2990_v0  ;;  %v2983_v42 = vadd.f32 %v2982_v14, %v2981_v40  ;;  %v3062_v46 = vrot.slane %v4116_v12, 3 }
 0xbfa   :  { %3576 = vlog2.f32 %v2992_v31  ;;  %v2984_v48 = vrot.slane %v2983_v42, 1 }
 0xbfc   :  { %v2985_v19 = vadd.f32 %v2984_v48, %v2983_v42 }
 0xbfe   :  { %3578 = vlog2.f32 %v2985_v19 }
 0xc04   :  { %v3577_v25 = vpop.eup %3576 }
 0xc05   :  { %v2996_v28 = vmul.f32 0.6931472, %v3577_v25  ;;  %v3061_v25 = vrot.slane %v4116_v12, 2 }
 0xc07   :  { %v2998_v41 = vadd.f32 %v2996_v28, %v2972_v32 }
 0xc08   :  { %v3579_v53 = vpop.eup %3578 }
 0xc09   :  { %v3004_v3 = vadd.f32 %v3000_v9, %v2998_v41  ;;  %v2994_v56 = vmul.f32 0.6931472, %v3579_v53 }
 0xc0b   :  { %v3015_v60 = vrot.slane %v3004_v3, %v3741_v43  ;;  %v2997_v39 = vadd.f32 %v2994_v56, %v2965_v10 }
 0xc0d   :  { %3017 = vbcast.lane.b32.xlu0 %v3015_v60, 256  ;;  %v3003_v27 = vadd.f32 %v2997_v39, %v4116_v12 }
 0xc0f   :  { %v3008_v20 = vrot.slane %v3003_v27, %v3741_v43 }
 0xc11   :  { %3010 = vbcast.lane.b32.xlu1 %v3008_v20, 256 }
 0xc7f   :  { %v3018_v8 = vpop.permute.xlu0 %3017 }
 0xc80   :  { %v3020_v21 = vadd.f32 %v3018_v8, %v4135_v23 }
 0xc82   :  { %v3028_v57 = vsel %vm2771_vm6, %v3020_v21, -inf }
 0xc83   :  { %v3029_v34 = vrot.slane %v3028_v57, 4  ;;  %v3011_v11 = vpop.permute.xlu1 %3010 }
 0xc84   :  { %v3019_v18 = vadd.f32 %v3011_v11, %v4135_v23 }
 0xc85   :  { %v3030_v37 = vmax.f32 %v3028_v57, %v3029_v34 }
 0xc86   :  { %v3021_v4 = vsel %vm2771_vm6, %v3019_v18, -inf }
 0xc87   :  { %v3031_v45 = vrot.slane %v3030_v37, 2  ;;  %v3022_v61 = vrot.slane %v3021_v4, 4 }
 0xc89   :  { %v3032_v63 = vmax.f32 %v3030_v37, %v3031_v45  ;;  %v3023_v15 = vmax.f32 %v3021_v4, %v3022_v61 }
 0xc8b   :  { %v3033_v29 = vrot.slane %v3032_v63, 1  ;;  %v3024_v55 = vrot.slane %v3023_v15, 2 }
 0xc8d   :  { %v3034_v33 = vmax.f32 %v3032_v63, %v3033_v29  ;;  %v3025_v22 = vmax.f32 %v3023_v15, %v3024_v55 }
 0xc8f   :  { %v3036_v6 = vsub.f32 %v3020_v21, %v3034_v33  ;;  %v3026_v24 = vrot.slane %v3025_v22, 1 }
 0xc91   :  { %v3039_v35 = vmul.f32 1.442695, %v3036_v6  ;;  %v3027_v5 = vmax.f32 %v3025_v22, %v3026_v24 }
 0xc93   :  { %3580 = vpow2.f32 %v3039_v35  ;;  %v3035_v7 = vsub.f32 %v3019_v18, %v3027_v5 }
 0xc95   :  { %v3037_v44 = vmul.f32 1.442695, %v3035_v7 }
 0xc97   :  { %3582 = vpow2.f32 %v3037_v44 }
 0xc9d   :  { %v3581_v62 = vpop.eup %3580 }
 0xc9e   :  { %v3048_v32 = vsel %vm2771_vm6, %v3581_v62, 0.0 }
 0xc9f   :  { %v3049_v54 = vrot.slane %v3048_v32, 4 }
 0xca1   :  { %v3583_v36 = vpop.eup %3582  ;;  %v3050_v47 = vadd.f32 %v3049_v54, %v3048_v32 }
 0xca2   :  { %v3041_v49 = vsel %vm2771_vm6, %v3583_v36, 0.0 }
 0xca3   :  { %v3042_v10 = vrot.slane %v3041_v49, 4  ;;  %v3051_v13 = vrot.slane %v3050_v47, 2 }
 0xca5   :  { %v3052_v17 = vadd.f32 %v3051_v13, %v3050_v47  ;;  %v3043_v52 = vadd.f32 %v3042_v10, %v3041_v49 }
 0xca7   :  { %v3053_v16 = vrot.slane %v3052_v17, 1  ;;  %v3044_v2 = vrot.slane %v3043_v52, 2 }
 0xca9   :  { %v3054_v30 = vadd.f32 %v3053_v16, %v3052_v17  ;;  %v3045_v1 = vadd.f32 %v3044_v2, %v3043_v52  ;;  %v3124_v2 = vrot.slane %v4116_v12, 5 }
 0xcab   :  { %3584 = vlog2.f32 %v3054_v30  ;;  %v3046_v58 = vrot.slane %v3045_v1, 1 }
 0xcad   :  { %v3047_v59 = vadd.f32 %v3046_v58, %v3045_v1 }
 0xcaf   :  { %3586 = vlog2.f32 %v3047_v59 }
 0xcb5   :  { %v3585_v38 = vpop.eup %3584 }
 0xcb6   :  { %v3058_v0 = vmul.f32 0.6931472, %v3585_v38 }
 0xcb8   :  { %v3060_v40 = vadd.f32 %v3058_v0, %v3034_v33  ;;  %v3123_v0 = vrot.slane %v4116_v12, 4 }
 0xcb9   :  { %v3587_v14 = vpop.eup %3586 }
 0xcba   :  { %v3066_v31 = vadd.f32 %v3062_v46, %v3060_v40  ;;  %v3056_v42 = vmul.f32 0.6931472, %v3587_v14  ;;  %v4202_v14 = vld [vmem:[%s4246_s1 + $0x8] sm:$0xff] }
 0xcbb   :  { %3333 = vmatmul.mubr.msk.f32.vlgmr.msra.gmra.mrb[30].mxu1 %vm2607_vm5, %v4202_v14 }
 0xcbc   :  { %v3077_v48 = vrot.slane %v3066_v31, %v3741_v43  ;;  %v3059_v19 = vadd.f32 %v3056_v42, %v3027_v5 }
 0xcbe   :  { %3079 = vbcast.lane.b32.xlu0 %v3077_v48, 256  ;;  %v3065_v28 = vadd.f32 %v3061_v25, %v3059_v19 }
 0xcc0   :  { %v3070_v41 = vrot.slane %v3065_v28, %v3741_v43 }
 0xcc2   :  { %3072 = vbcast.lane.b32.xlu1 %v3070_v41, 256 }
 0xd30   :  { %v3080_v9 = vpop.permute.xlu0 %3079 }
 0xd31   :  { %v3082_v53 = vadd.f32 %v3080_v9, %v4135_v23 }
 0xd33   :  { %v3090_v3 = vsel %vm2771_vm6, %v3082_v53, -inf }
 0xd34   :  { %v3091_v56 = vrot.slane %v3090_v3, 4  ;;  %v3073_v60 = vpop.permute.xlu1 %3072 }
 0xd35   :  { %v3081_v39 = vadd.f32 %v3073_v60, %v4135_v23 }
 0xd36   :  { %v3092_v27 = vmax.f32 %v3090_v3, %v3091_v56 }
 0xd37   :  { %v3083_v20 = vsel %vm2771_vm6, %v3081_v39, -inf }
 0xd38   :  { %v3093_v8 = vrot.slane %v3092_v27, 2  ;;  %v3084_v21 = vrot.slane %v3083_v20, 4 }
 0xd3a   :  { %v3094_v57 = vmax.f32 %v3092_v27, %v3093_v8  ;;  %v3085_v34 = vmax.f32 %v3083_v20, %v3084_v21 }
 0xd3c   :  { %v3095_v11 = vrot.slane %v3094_v57, 1  ;;  %v3086_v18 = vrot.slane %v3085_v34, 2 }
 0xd3e   :  { %v3096_v37 = vmax.f32 %v3094_v57, %v3095_v11  ;;  %v3087_v4 = vmax.f32 %v3085_v34, %v3086_v18 }
 0xd40   :  { %v3098_v45 = vsub.f32 %v3082_v53, %v3096_v37  ;;  %v3088_v61 = vrot.slane %v3087_v4, 1 }
 0xd42   :  { %v3101_v63 = vmul.f32 1.442695, %v3098_v45  ;;  %v3089_v15 = vmax.f32 %v3087_v4, %v3088_v61 }
 0xd44   :  { %3588 = vpow2.f32 %v3101_v63  ;;  %v3097_v29 = vsub.f32 %v3081_v39, %v3089_v15 }
 0xd46   :  { %v3099_v55 = vmul.f32 1.442695, %v3097_v29 }
 0xd48   :  { %3590 = vpow2.f32 %v3099_v55 }
 0xd4e   :  { %v3589_v33 = vpop.eup %3588 }
 0xd4f   :  { %v3110_v22 = vsel %vm2771_vm6, %v3589_v33, 0.0 }
 0xd50   :  { %v3111_v6 = vrot.slane %v3110_v22, 4 }
 0xd52   :  { %v3591_v24 = vpop.eup %3590  ;;  %v3112_v35 = vadd.f32 %v3111_v6, %v3110_v22 }
 0xd53   :  { %v3103_v5 = vsel %vm2771_vm6, %v3591_v24, 0.0 }
 0xd54   :  { %v3104_v7 = vrot.slane %v3103_v5, 4  ;;  %v3113_v44 = vrot.slane %v3112_v35, 2 }
 0xd56   :  { %v3114_v62 = vadd.f32 %v3113_v44, %v3112_v35  ;;  %v3105_v32 = vadd.f32 %v3104_v7, %v3103_v5 }
 0xd58   :  { %v3115_v54 = vrot.slane %v3114_v62, 1  ;;  %v3106_v36 = vrot.slane %v3105_v32, 2 }
 0xd5a   :  { %v3116_v47 = vadd.f32 %v3115_v54, %v3114_v62  ;;  %v3107_v49 = vadd.f32 %v3106_v36, %v3105_v32  ;;  %v3186_v32 = vrot.slane %v4116_v12, 7 }
 0xd5c   :  { %3592 = vlog2.f32 %v3116_v47  ;;  %v3108_v10 = vrot.slane %v3107_v49, 1  ;;  %v68_v47 = vld [vmem:[#allocation2 + $0x127] ss:$0 sm:$0xff] }
 0xd5e   :  { %v3109_v13 = vadd.f32 %v3108_v10, %v3107_v49 }
 0xd60   :  { %3594 = vlog2.f32 %v3109_v13 }
 0xd66   :  { %v3593_v17 = vpop.eup %3592 }
 0xd67   :  { %v3120_v52 = vmul.f32 0.6931472, %v3593_v17  ;;  %v3185_v17 = vrot.slane %v4116_v12, 6 }
 0xd69   :  { %v3122_v16 = vadd.f32 %v3120_v52, %v3096_v37 }
 0xd6a   :  { %v3595_v30 = vpop.eup %3594 }
 0xd6b   :  { %v3128_v1 = vadd.f32 %v3124_v2, %v3122_v16  ;;  %v3118_v58 = vmul.f32 0.6931472, %v3595_v30  ;;  %v2605_v2 = vmul.f32 %v4112_v51, %v4120_v26  ;;  %v2606_v30 = vmul.f32 %v4202_v14, %v4116_v12 }
 0xd6c   :  { %v2732_v12 = vrot.slane %v4202_v14, 2 }
 0xd6d   :  { %v3139_v59 = vrot.slane %v3128_v1, %v3741_v43  ;;  %v3121_v38 = vadd.f32 %v3118_v58, %v3089_v15 }
 0xd6f   :  { %3141 = vbcast.lane.b32.xlu0 %v3139_v59, 256  ;;  %v3127_v40 = vadd.f32 %v3123_v0, %v3121_v38  ;;  %v2608_v0 = vsel %vm2607_vm5, %v2605_v2, 0.0 }
 0xd71   :  { %v3132_v46 = vrot.slane %v3127_v40, %v3741_v43  ;;  %v2609_v40 = vsel %vm2607_vm5, %v2606_v30, 0.0 }
 0xd73   :  { %3134 = vbcast.lane.b32.xlu1 %v3132_v46, 256  ;;  %v2620_v46 = vmul.f32 %v4112_v51, %v4118_v50 }
 0xd75   :  { %v2622_v26 = vsel %vm2621_vm9, %v2620_v46, 0.0 }
 0xde1   :  { %v3142_v31 = vpop.permute.xlu0 %3141 }
 0xde2   :  { %v3144_v42 = vadd.f32 %v3142_v31, %v4135_v23  ;;  %v2610_v31 = vadd.f32 %v2609_v40, %v2608_v0 }
 0xde4   :  { %v3152_v48 = vsel %vm2771_vm6, %v3144_v42, -inf }
 0xde5   :  { %v3153_v43 = vrot.slane %v3152_v48, 4  ;;  %v3135_v19 = vpop.permute.xlu1 %3134 }
 0xde6   :  { %v3143_v25 = vadd.f32 %v3135_v19, %v4135_v23 }
 0xde7   :  { %v3154_v28 = vmax.f32 %v3152_v48, %v3153_v43  ;;  %v3334_v43 = vpop.f32.mrb[30].mxu1 }
 0xde8   :  { %v3145_v41 = vsel %vm2771_vm6, %v3143_v25, -inf  ;;  %v2737_v19 = vmul.f32 %v3334_v43, %v2732_v12 }
 0xde9   :  { %v3155_v9 = vrot.slane %v3154_v28, 2  ;;  %v3146_v53 = vrot.slane %v3145_v41, 4 }
 0xdeb   :  { %v3156_v3 = vmax.f32 %v3154_v28, %v3155_v9  ;;  %v3147_v56 = vmax.f32 %v3145_v41, %v3146_v53  ;;  %v2740_v41 = vsel %vm2739_vm10, %v2737_v19, 0.0 }
 0xded   :  { %v3157_v60 = vrot.slane %v3156_v3, 1  ;;  %v3148_v39 = vrot.slane %v3147_v56, 2 }
 0xdef   :  { %v3158_v27 = vmax.f32 %v3156_v3, %v3157_v60  ;;  %v3149_v20 = vmax.f32 %v3147_v56, %v3148_v39 }
 0xdf1   :  { %v3160_v8 = vsub.f32 %v3144_v42, %v3158_v27  ;;  %v3150_v21 = vrot.slane %v3149_v20, 1  ;;  %v2731_v42 = vrot.slane %v4112_v51, 2 }
 0xdf3   :  { %v3163_v57 = vmul.f32 1.442695, %v3160_v8  ;;  %v3151_v34 = vmax.f32 %v3149_v20, %v3150_v21  ;;  %v2733_v48 = vsel %vm2422_vm4, %v2731_v42, %v2732_v12 }
 0xdf5   :  { %3596 = vpow2.f32 %v3163_v57  ;;  %v3159_v11 = vsub.f32 %v3143_v25, %v3151_v34  ;;  %v2722_v25 = vpop.f32.mrb[31].mxu1 }
 0xdf6   :  { %v2736_v28 = vmul.f32 %v2733_v48, %v2722_v25 }
 0xdf7   :  { %v3161_v18 = vmul.f32 1.442695, %v3159_v11 }
 0xdf8   :  { %v2738_v9 = vsel %vm2607_vm5, %v2736_v28, 0.0 }
 0xdf9   :  { %3598 = vpow2.f32 %v3161_v18  ;;  %v2741_v50 = vadd.f32 %v2740_v41, %v2738_v9 }
 0xdff   :  { %v3597_v23 = vpop.eup %3596 }
 0xe00   :  { %v3172_v37 = vsel %vm2771_vm6, %v3597_v23, 0.0 }
 0xe01   :  { %v3173_v4 = vrot.slane %v3172_v37, 4 }
 0xe03   :  { %v3599_v45 = vpop.eup %3598  ;;  %v3174_v61 = vadd.f32 %v3173_v4, %v3172_v37 }
 0xe04   :  { %v3165_v63 = vsel %vm2771_vm6, %v3599_v45, 0.0 }
 0xe05   :  { %v3175_v15 = vrot.slane %v3174_v61, 2  ;;  %v3166_v29 = vrot.slane %v3165_v63, 4 }
 0xe07   :  { %v3176_v55 = vadd.f32 %v3175_v15, %v3174_v61  ;;  %v3167_v33 = vadd.f32 %v3166_v29, %v3165_v63  ;;  %v2632_v61 = vmul.f32 %v4202_v14, %v68_v47 }
 0xe09   :  { %v3177_v22 = vrot.slane %v3176_v55, 1  ;;  %v3168_v6 = vrot.slane %v3167_v33, 2 }
 0xe0b   :  { %v3178_v24 = vadd.f32 %v3177_v22, %v3176_v55  ;;  %v3169_v35 = vadd.f32 %v3168_v6, %v3167_v33  ;;  %v2634_v22 = vrot.slane %v2632_v61, 6 }
 0xe0d   :  { %3600 = vlog2.f32 %v3178_v24  ;;  %v3170_v5 = vrot.slane %v3169_v35, 1 }
 0xe0f   :  { %v3171_v7 = vadd.f32 %v3170_v5, %v3169_v35  ;;  %v2636_v35 = vsel %vm2621_vm9, %v2634_v22, 0.0 }
 0xe11   :  { %3602 = vlog2.f32 %v3171_v7 }
 0xe17   :  { %v3601_v44 = vpop.eup %3600 }
 0xe18   :  { %v3182_v62 = vmul.f32 0.6931472, %v3601_v44 }
 0xe1a   :  { %v3184_v54 = vadd.f32 %v3182_v62, %v3158_v27 }
 0xe1b   :  { %v3603_v36 = vpop.eup %3602 }
 0xe1c   :  { %v3190_v49 = vadd.f32 %v3186_v32, %v3184_v54  ;;  %v3180_v10 = vmul.f32 0.6931472, %v3603_v36 }
 0xe1e   :  { %v3183_v13 = vadd.f32 %v3180_v10, %v3151_v34  ;;  %v3192_v52 = vadd.f32 %v3190_v49, %v68_v47 }
 0xe20   :  { %v3189_v16 = vadd.f32 %v3185_v17, %v3183_v13  ;;  %v3195_v58 = vrot.slane %v3192_v52, 7 }
 0xe22   :  { %v3191_v1 = vadd.f32 %v3189_v16, %v68_v47 }
 0xe24   :  { %v3197_v59 = vsel %vm3196_vm8, %v3195_v58, %v3191_v1 }
 0xe25   :  { %v3199_v38 = vsel %vm2621_vm9, %v3197_v59, -inf }
 0xe26   :  { %3200 = vmax.xlane.f32.xlu0 %v3199_v38 }
 0xe2a   :  { %2611 = vadd.xlane.f32.xlu0 %v2610_v31 }
 0xe2e   :  { %2623 = vadd.xlane.f32.xlu0 %v2622_v26 }
 0xe32   :  { %2742 = vadd.xlane.f32.xlu0 %v2741_v50 }
 0xeb3   :  { %v3201_v53 = vpop.xlane.xlu0 %3200 }
 0xeb4   :  { %v3203_v3 = vrot.slane %v3201_v53, 1  ;;  %v3206_v56 = vsub.f32 %v3191_v1, %v3201_v53 }
 0xeb6   :  { %v3207_v60 = vsub.f32 %v3192_v52, %v3203_v3  ;;  %v3208_v27 = vmul.f32 1.442695, %v3206_v56 }
 0xeb7   :  { %v2612_v39 = vpop.xlane.xlu0 %2611 }
 0xeb8   :  { %v3210_v20 = vmul.f32 1.442695, %v3207_v60  ;;  %v2613_v51 = vrot.slane %v2612_v39, 4 }
 0xeba   :  { %3604 = vpow2.f32 %v3210_v20  ;;  %v2614_v8 = vadd.f32 %v2613_v51, %v2612_v39 }
 0xebb   :  { %v2624_v21 = vpop.xlane.xlu0 %2623  ;;  %3606 = vpow2.f32 %v3208_v27 }
 0xebc   :  { %v2615_v57 = vrot.slane %v2614_v8, 2  ;;  %v2625_v34 = vrot.slane %v2624_v21, 4 }
 0xebe   :  { %v2626_v11 = vadd.f32 %v2625_v34, %v2624_v21  ;;  %v2616_v18 = vadd.f32 %v2615_v57, %v2614_v8 }
 0xebf   :  { %v2743_v5 = vpop.xlane.xlu0 %2742 }
 0xec0   :  { %v2627_v23 = vrot.slane %v2626_v11, 2  ;;  %v2617_v37 = vrot.slane %v2616_v18, 1  ;;  %v2744_v7 = vrot.slane %v2743_v5, 4 }
 0xec2   :  { %v2618_v4 = vadd.f32 %v2617_v37, %v2616_v18  ;;  %v2628_v45 = vadd.f32 %v2627_v23, %v2626_v11  ;;  %v2745_v44 = vadd.f32 %v2744_v7, %v2743_v5 }
 0xec4   :  { %v3605_v63 = vpop.eup %3604  ;;  %3453 = vpush %v2618_v4  ;;  %v2629_v15 = vrot.slane %v2628_v45, 1  ;;  %v2746_v62 = vrot.slane %v2745_v44, 2 }
 0xec5   :  { %v3214_v29 = vrot.slane %v3605_v63, 7  ;;  %v3607_v55 = vpop.eup %3606 }
 0xec6   :  { %v2630_v33 = vadd.f32 %v2629_v15, %v2628_v45  ;;  %v2747_v36 = vadd.f32 %v2746_v62, %v2745_v44 }
 0xec7   :  { %v3215_v6 = vsel %vm3196_vm8, %v3214_v29, %v3607_v55 }
 0xec8   :  { %3455 = vpush %v2630_v33  ;;  %v3217_v24 = vsel %vm2621_vm9, %v3215_v6, 0.0  ;;  %v2748_v10 = vrot.slane %v2747_v36, 1 }
 0xec9   :  { %3218 = vadd.xlane.f32.xlu1 %v3217_v24 }
 0xeca   :  { %v2749_v30 = vadd.f32 %v2748_v10, %v2747_v36 }
 0xecd   :  { %2637 = vadd.xlane.f32.xlu1 %v2636_v35 }
 0xef5   :  { %s3454_s1 = spop %3453 }
 0xef9   :  { %s3456_s12 = spop %3455 }
 0xefa   :  { %s2751_s14 = sadd.f32 %s3456_s12, %s3454_s1 }
 0xf56   :  { %v3219_v14 = vpop.xlane.xlu1 %3218 }
 0xf57   :  { %3608 = vlog2.f32 %v3219_v14 }
 0xf5a   :  { %v2638_v32 = vpop.xlane.xlu1 %2637 }
 0xf5b   :  { %v2639_v54 = vrot.slane %v2638_v32, 4 }
 0xf5d   :  { %v2640_v47 = vadd.f32 %v2639_v54, %v2638_v32 }
 0xf5f   :  { %v2641_v49 = vrot.slane %v2640_v47, 2 }
 0xf61   :  { %v3609_v13 = vpop.eup %3608  ;;  %v2642_v17 = vadd.f32 %v2641_v49, %v2640_v47 }
 0xf62   :  { %v3221_v52 = vmul.f32 0.6931472, %v3609_v13 }
 0xf63   :  { %v2643_v16 = vrot.slane %v2642_v17, 1 }
 0xf64   :  { %v3222_v2 = vadd.f32 %v3221_v52, %v3201_v53 }
 0xf65   :  { %v2644_v1 = vadd.f32 %v2643_v16, %v2642_v17 }
 0xf66   :  { %v3224_v58 = vsel %vm3223_vm11, %v3222_v2, 0.0 }
 0xf67   :  { %3225 = vadd.xlane.f32.xlu1 %v3224_v58  ;;  %3457 = vpush %v2644_v1 }
 0xf68   :  { %3459 = vpush %v2749_v30 }
 0xf98   :  { %s3458_s13 = spop %3457 }
 0xf99   :  { %s2752_s15 = sadd.f32 %s3458_s13, %s2751_s14  ;;  %s3460_s16 = spop %3459 }
 0xf9b   :  { %s2753_s17 = sadd.f32 %s3460_s16, %s2752_s15 }
 0xff4   :  { %v3226_v59 = vpop.xlane.xlu1 %3225 }
 0xff5   :  { %v3227_v38 = vrot.slane %v3226_v59, 4 }
 0xff7   :  { %v3228_v0 = vadd.f32 %v3227_v38, %v3226_v59 }
 0xff9   :  { %v3229_v40 = vrot.slane %v3228_v0, 2 }
 0xffb   :  { %v3230_v46 = vadd.f32 %v3229_v40, %v3228_v0 }
 0xffd   :  { %v3231_v31 = vrot.slane %v3230_v46, 1 }
 0xfff   :  { %v3232_v26 = vadd.f32 %v3231_v31, %v3230_v46 }
0x1001   :  { %3461 = vpush %v3232_v26 }
0x1032   :  { %s3462_s18 = spop %3461 }
0x1033   :  { %s3234_s19 = ssub.f32 %s3462_s18, %s2753_s17 }
0x1035   :  { %3236 = sst [smem:[#allocation5]] %s3234_s19 }
0x1036   :  { %3641 = shalt.err (!%p3638_p10)
}
0x1037   :  { %s3650_s27 = smov [#allocation5]  }
0x1038   :  { %3246 = dma.smem_to_hbm %s3650_s27, 16, %s4249_s4, [#allocation4]  }
0x1039   :  { %3644 = dma.done.wait [#allocation4], 16  }
0x103a   :  { %3645 = vsyncadd [#allocation4], 4294967280 }
0x103b   :  { %3252 = sfence }
0x103c   :  { %3253 = vsyncpa [#allocation3], 1 }
0x103d   :  { %3254 = vsyncpa [#allocation4], 1 }

</bundles_post_ra>
